<compile_context>
chip_gen: v5e
topology: v5e:2x2
jax: 0.10.0
libtpu: 0.0.40
codegen_flags: <defaults>
</compile_context>

<pallas_src>
import functools
import math

import jax
import jax.numpy as jnp
from jax.experimental import pallas as pl
from jax.experimental.pallas import tpu as pltpu

_LANE = 128
_SUBLANE = 8


def _round_up(x, m):
    return (x + m - 1) // m * m


def _vmem_capacity_bytes():
    """Physical VMEM per TensorCore; conservative (v7x) fallback if query fails."""
    try:
        info = pltpu.get_tpu_info()
        cap = int(getattr(info, "vmem_capacity_bytes", 0))
        if cap > 0:
            return cap
    except Exception:
        pass
    return 64 * 2**20


def _gru_layer_kernel(x_ref, h0_ref, wih_ref, whh_ref, bi_ref, bhn_ref,
                      y_ref, hlast_ref, h_scr, gi_scr,
                      *, t_chunk, t_real, has_tail, unroll):
    """One time-chunk of one GRU layer. Grid=(n_chunks,), iterated sequentially.

    x_ref:     (Tc*Bp, D_in)  bf16  time-major flattened chunk of inputs
    h0_ref:    (Bp, Hp)       f32   initial hidden (used only at chunk 0)
    wih_ref:   (D_in, 3*Hp)   bf16  pre-transposed, gate-padded input weights
    whh_ref:   (Hp, 3*Hp)     bf16  pre-transposed, gate-padded hidden weights
    bi_ref:    (1, 3*Hp)      f32   [b_ir+b_hr, b_iz+b_hz, b_in] (pre-folded)
    bhn_ref:   (1, Hp)        f32   b_hn (kept separate: lives inside r*(...))
    y_ref:     (Tc*Bp, Hp)    bf16  per-step hidden outputs for this chunk
    hlast_ref: (Bp, Hp)       f32   final hidden (constant block -> written at end)
    h_scr:     (Bp, Hp)       f32   carried hidden state across chunks
    gi_scr:    (Tc*Bp, 3*Hp)  f32   hoisted input-projection buffer
    """
    c = pl.program_id(0)

    @pl.when(c == 0)
    def _():
        h_scr[...] = h0_ref[...]

    # (1) Hoisted input projection: one large bf16 MXU matmul per chunk, off the
    #     serial critical path. r/z biases are already folded into bi.
    gi_scr[...] = (
        jnp.dot(x_ref[...], wih_ref[...], preferred_element_type=jnp.float32)
        + bi_ref[...]
    )

    bp = h_scr.shape[0]          # batch padded to a sublane multiple of 8
    hp = h_scr.shape[1]          # hidden padded to a lane multiple of 128

    # (2) Recurrence: per step only the (Bp,Hp)@(Hp,3Hp) hidden matmul + gate math.
    #     Bp is a multiple of 8 -> gi loads / y stores are full-sublane aligned.
    # TODO(synk): keep W_hh resident in the MXU via pltpu.matmul_push_rhs and drive
    #   per-step products with matmul_acc_lhs/matmul_pop (avoids per-step RHS push).
    def step(t, h):
        row = pl.multiple_of(t * bp, bp)
        gi = gi_scr[pl.ds(row, bp), :]                               # (Bp, 3Hp)
        gh = jnp.dot(h.astype(jnp.bfloat16), whh_ref[...],
                     preferred_element_type=jnp.float32)             # (Bp, 3Hp)
        r = jax.nn.sigmoid(gi[:, :hp] + gh[:, :hp])
        z = jax.nn.sigmoid(gi[:, hp:2 * hp] + gh[:, hp:2 * hp])
        n = jnp.tanh(gi[:, 2 * hp:] + r * (gh[:, 2 * hp:] + bhn_ref[...]))
        h_new = (1.0 - z) * n + z * h
        if has_tail:
            # Mask updates from zero-padded trailing timesteps so the carried hidden
            # (and thus hlast_ref) is never contaminated.
            m = (c * t_chunk + t < t_real).astype(h_new.dtype)
            h_new = m * h_new + (1.0 - m) * h
        y_ref[pl.ds(row, bp), :] = h_new.astype(y_ref.dtype)
        return h_new

    h_scr[...] = jax.lax.fori_loop(0, t_chunk, step, h_scr[...], unroll=unroll)
    hlast_ref[...] = h_scr[...]


def _gru_layer(x2d, h0p, wih, whh, bi, bhn, *, batch_pad, t_chunk, t_real):
    """x2d: (T_pad*Bp, D_in) bf16 time-major flattened.

    Returns (y2d (T_pad*Bp, Hp) bf16, h_last (Bp, Hp) f32)."""
    rows, d_in = x2d.shape
    hp = h0p.shape[-1]
    block_rows = t_chunk * batch_pad
    n_chunks = rows // block_rows
    has_tail = (n_chunks * t_chunk) > t_real

    # VMEM budget estimate (double-buffered x/y chunks, double-buffered weights,
    # scratch), capped well below the physical capacity of this generation.
    cap = _vmem_capacity_bytes()
    est = (2 * 2 * (wih.size + whh.size)              # bf16 weights, 2 buffers each
           + 2 * 4 * (bi.size + bhn.size)
           + 2 * block_rows * d_in * 2                # x chunk bf16, 2 buffers
           + 2 * block_rows * hp * 2                  # y chunk bf16, 2 buffers
           + 3 * batch_pad * hp * 4                   # h0 + hlast + h_scr
           + block_rows * 3 * hp * 4)                 # gi_scr
    vmem_limit = int(min(int(0.75 * cap),
                         max(2 * est + (1 << 20), 16 * 2**20)))

    kernel = functools.partial(
        _gru_layer_kernel, t_chunk=t_chunk, t_real=t_real, has_tail=has_tail,
        unroll=int(min(8, t_chunk)))

    grid_spec = pltpu.PrefetchScalarGridSpec(
        num_scalar_prefetch=0,
        grid=(n_chunks,),
        in_specs=[
            pl.BlockSpec((block_rows, d_in), lambda c: (c, 0)),   # x chunk (bf16)
            pl.BlockSpec((batch_pad, hp), lambda c: (0, 0)),      # h0
            pl.BlockSpec((d_in, 3 * hp), lambda c: (0, 0)),       # W_ih^T (bf16)
            pl.BlockSpec((hp, 3 * hp), lambda c: (0, 0)),         # W_hh^T (bf16)
            pl.BlockSpec((1, 3 * hp), lambda c: (0, 0)),          # folded input bias
            pl.BlockSpec((1, hp), lambda c: (0, 0)),              # b_hn
        ],
        out_specs=[
            pl.BlockSpec((block_rows, hp), lambda c: (c, 0)),     # y chunk (bf16)
            pl.BlockSpec((batch_pad, hp), lambda c: (0, 0)),      # final hidden (f32)
        ],
        scratch_shapes=[
            pltpu.VMEM((batch_pad, hp), jnp.float32),             # carried hidden
            pltpu.VMEM((block_rows, 3 * hp), jnp.float32),        # hoisted gi buffer
        ],
    )

    y2d, h_last = pl.pallas_call(
        kernel,
        out_shape=[jax.ShapeDtypeStruct((rows, hp), jnp.bfloat16),
                   jax.ShapeDtypeStruct((batch_pad, hp), jnp.float32)],
        grid_spec=grid_spec,
        compiler_params=pltpu.CompilerParams(
            dimension_semantics=("arbitrary",),   # time is a true recurrence
            vmem_limit_bytes=vmem_limit,
        ),
    )(x2d, h0p, wih, whh, bi, bhn)
    return y2d, h_last


class EncoderGRUPallas:
    """JAX/Pallas port of EncoderGRU (nn.GRU never receives dropout_p -> no dropout)."""

    def __init__(self, input_size, hidden_size, n_layers, key, dropout_p=0.1):
        self.input_size = int(input_size)
        self.hidden_size = int(hidden_size)
        self.n_layers = int(n_layers)
        self.h_pad = _round_up(self.hidden_size, _LANE)
        self.d_pad = _round_up(self.input_size, _LANE)   # lane-dense layer-0 LHS

        self.raw_params = []      # PyTorch-layout f32 params (reference / export)
        self.kernel_params = []   # padded / transposed / bf16 weights + folded biases
        k = 1.0 / math.sqrt(self.hidden_size)
        H, Hp = self.hidden_size, self.h_pad
        for layer in range(self.n_layers):
            d_in = self.input_size if layer == 0 else H
            d_in_k = self.d_pad if layer == 0 else Hp
            key, k1, k2, k3, k4 = jax.random.split(key, 5)
            # PyTorch stores weight_ih_l{k}: (3H, d_in), weight_hh_l{k}: (3H, H).
            w_ih = jax.random.uniform(k1, (3 * H, d_in), jnp.float32, -k, k)
            w_hh = jax.random.uniform(k2, (3 * H, H), jnp.float32, -k, k)
            b_ih = jax.random.uniform(k3, (3 * H,), jnp.float32, -k, k)
            b_hh = jax.random.uniform(k4, (3 * H,), jnp.float32, -k, k)
            self.raw_params.append((w_ih, w_hh, b_ih, b_hh))

            def pad_gates(w_t, rows_to):
                # w_t: (d, 3H) -> per-gate lane-padded (rows_to, 3*Hp)
                d = w_t.shape[0]
                gates = [w_t[:, g * H:(g + 1) * H] for g in range(3)]
                gates = [jnp.pad(g_, ((0, rows_to - d), (0, Hp - H))) for g_ in gates]
                return jnp.concatenate(gates, axis=1)

            wih_k = pad_gates(w_ih.T, d_in_k).astype(jnp.bfloat16)
            whh_k = pad_gates(w_hh.T, Hp).astype(jnp.bfloat16)

            # Pre-fold r/z biases; keep b_hn separate (it sits inside r*(...)).
            b_r = b_ih[:H] + b_hh[:H]
            b_z = b_ih[H:2 * H] + b_hh[H:2 * H]
            b_in = b_ih[2 * H:]
            b_hn = b_hh[2 * H:]
            bi_k = jnp.concatenate(
                [jnp.pad(v, (0, Hp - H)) for v in (b_r, b_z, b_in)])[None, :]
            bhn_k = jnp.pad(b_hn, (0, Hp - H))[None, :]
            self.kernel_params.append(
                (wih_k, whh_k, bi_k.astype(jnp.float32), bhn_k.astype(jnp.float32)))

    def init_hidden(self, batch_size):
        if batch_size != 0:
            h = jnp.zeros((self.n_layers, batch_size, self.hidden_size), jnp.float32)
        else:
            h = jnp.zeros((self.n_layers, self.hidden_size), jnp.float32)
        # Original uses torch.squeeze (drops ALL size-1 dims -> ambiguous for B==1);
        # only squeeze the layer axis when unambiguous so forward can re-expand it.
        return jnp.squeeze(h, axis=0) if self.n_layers == 1 else h

    def _pick_t_chunk(self, T, batch_pad):
        """VMEM-capacity-aware time-chunk size (biggest chunk that comfortably fits)."""
        Hp, Dp = self.h_pad, max(self.d_pad, self.h_pad)
        cap = _vmem_capacity_bytes()
        budget = int(0.5 * cap)
        fixed = 2 * 2 * (Dp + Hp) * 3 * Hp + 4 * batch_pad * Hp * 4
        per_step = batch_pad * (2 * 2 * Dp + 2 * 2 * Hp + 4 * 3 * Hp)
        t_cap = max(1, (budget - fixed) // per_step)
        return int(max(1, min(T, t_cap, 64)))

    def forward(self, x, input_h=None):
        B, T, D = x.shape
        H, Hp = self.hidden_size, self.h_pad
        Dp = self.d_pad
        if input_h is None:
            input_h = jnp.zeros((self.n_layers, B, H), jnp.float32)
        elif input_h.ndim == 2:  # squeezed single-layer hidden (B, H)
            input_h = input_h[None]

        Bp = _round_up(max(B, 1), _SUBLANE)           # sublane-aligned batch
        h0_pad = jnp.pad(input_h.astype(jnp.float32),
                         ((0, 0), (0, Bp - B), (0, Hp - H)))

        t_chunk = self._pick_t_chunk(T, Bp)
        t_pad = _round_up(T, t_chunk)

        # Time-major layout, batch/feature/time padded, flattened so each chunk is a
        # single lane-dense 2-D tile; bf16 halves the per-layer HBM slab traffic.
        cur = jnp.transpose(x, (1, 0, 2)).astype(jnp.float32)
        cur = jnp.pad(cur, ((0, t_pad - T), (0, Bp - B), (0, Dp - D)))
        cur = cur.reshape(t_pad * Bp, Dp).astype(jnp.bfloat16)

        h_finals = []
        # TODO(synk): fuse all layers into a single wavefront kernel and add a
        #   parallel batch-group grid axis to use both v7x TensorCores.
        for layer in range(self.n_layers):
            wih, whh, bi, bhn = self.kernel_params[layer]
            cur, h_last = _gru_layer(cur, h0_pad[layer], wih, whh, bi, bhn,
                                     batch_pad=Bp, t_chunk=t_chunk, t_real=T)
            h_finals.append(h_last[:B, :H])

        output = jnp.transpose(
            cur.reshape(t_pad, Bp, Hp)[:T, :B, :H], (1, 0, 2)).astype(jnp.float32)
        hidden = jnp.stack(h_finals, axis=0)
        return output, hidden


def _gru_reference(x, h0, raw_params):
    """Pure-JAX reference mirroring the kernel's bf16 matmuls and bf16 inter-layer
    activation storage (hidden recurrence stays f32, like the kernel)."""
    cur = x.astype(jnp.float32)
    hs = []
    for layer, (w_ih, w_hh, b_ih, b_hh) in enumerate(raw_params):
        H = w_hh.shape[1]
        wih_t = w_ih.T.astype(jnp.bfloat16)
        whh_t = w_hh.T.astype(jnp.bfloat16)
        h = h0[layer]
        ys = []
        for t in range(cur.shape[1]):
            x_t = cur[:, t, :]
            gi = jnp.dot(x_t.astype(jnp.bfloat16), wih_t,
                         preferred_element_type=jnp.float32) + b_ih
            gh = jnp.dot(h.astype(jnp.bfloat16), whh_t,
                         preferred_element_type=jnp.float32) + b_hh
            r = jax.nn.sigmoid(gi[:, :H] + gh[:, :H])
            z = jax.nn.sigmoid(gi[:, H:2 * H] + gh[:, H:2 * H])
            n = jnp.tanh(gi[:, 2 * H:] + r * gh[:, 2 * H:])
            h = (1.0 - z) * n + z * h
            ys.append(h)
        # Mirror the kernel's bf16 y storage between layers / at the output.
        cur = jnp.stack(ys, axis=1).astype(jnp.bfloat16).astype(jnp.float32)
        hs.append(h)
    return cur, jnp.stack(hs, axis=0)


if __name__ == "__main__":
    B, T, D_IN, HID, N_LAYERS = 2, 8, 16, 32, 2

    key = jax.random.PRNGKey(0)
    k_param, k_x, k_x2 = jax.random.split(key, 3)
    model = EncoderGRUPallas(D_IN, HID, N_LAYERS, k_param)

    x = jax.random.normal(k_x, (B, T, D_IN), jnp.float32)

    # Case 1: input_h is None -> zero-initialized hidden (init_hidden path).
    out, hid = model.forward(x, None)
    out, hid = jax.block_until_ready(out), jax.block_until_ready(hid)
    assert out.shape == (B, T, HID) and hid.shape == (N_LAYERS, B, HID)

    # Case 2: explicit input_h.
    h0 = jnp.zeros((N_LAYERS, B, HID), jnp.float32)
    out2, hid2 = model.forward(x, h0)
    out2, hid2 = jax.block_until_ready(out2), jax.block_until_ready(hid2)

    # Validate against the bf16-matmul pure-JAX reference.
    ref_out, ref_hid = _gru_reference(x, h0, model.raw_params)
    assert jnp.allclose(out, ref_out, atol=5e-3, rtol=5e-3), "output mismatch"
    assert jnp.allclose(hid, ref_hid, atol=5e-3, rtol=5e-3), "hidden mismatch"
    assert jnp.allclose(out, out2) and jnp.allclose(hid, hid2)

    # Case 3: longer sequence that exercises multi-chunk carry + padded-tail masking.
    T_LONG = 70
    x_long = jax.random.normal(k_x2, (B, T_LONG, D_IN), jnp.float32)
    out3, hid3 = model.forward(x_long, None)
    out3, hid3 = jax.block_until_ready(out3), jax.block_until_ready(hid3)
    ref_out3, ref_hid3 = _gru_reference(
        x_long, jnp.zeros((N_LAYERS, B, HID), jnp.float32), model.raw_params)
    assert jnp.allclose(out3, ref_out3, atol=5e-3, rtol=5e-3), "long output mismatch"
    assert jnp.allclose(hid3, ref_hid3, atol=5e-3, rtol=5e-3), "long hidden mismatch"

    print("KERNEL_OK")
</pallas_src>

<mosaic_0001>
module attributes {stable_mosaic.version = 11 : i64} {
  func.func @_gru_layer_kernel(%arg0: i32, %arg1: memref<64x128xbf16, #tpu.memory_space<vmem>>, %arg2: memref<8x128xf32, #tpu.memory_space<vmem>>, %arg3: memref<128x384xbf16, #tpu.memory_space<vmem>>, %arg4: memref<128x384xbf16, #tpu.memory_space<vmem>>, %arg5: memref<1x384xf32, #tpu.memory_space<vmem>>, %arg6: memref<1x128xf32, #tpu.memory_space<vmem>>, %arg7: memref<64x128xbf16, #tpu.memory_space<vmem>>, %arg8: memref<8x128xf32, #tpu.memory_space<vmem>>, %arg9: memref<8x128xf32, #tpu.memory_space<vmem>>, %arg10: memref<64x384xf32, #tpu.memory_space<vmem>>) attributes {dimension_semantics = [#tpu.dimension_semantics<arbitrary>], iteration_bounds = array<i64: 1>, scalar_prefetch = 0 : i64, scratch_operands = 2 : i64, tpu.core_type = #tpu.core_type<tc>, window_params = [{transform_indices = @transform_0, window_bounds = array<i64: 64, 128>}, {pipeline_mode = #tpu.pipeline_mode<synchronous>, transform_indices = @transform_1, window_bounds = array<i64: 8, 128>}, {pipeline_mode = #tpu.pipeline_mode<synchronous>, transform_indices = @transform_2, window_bounds = array<i64: 128, 384>}, {pipeline_mode = #tpu.pipeline_mode<synchronous>, transform_indices = @transform_3, window_bounds = array<i64: 128, 384>}, {pipeline_mode = #tpu.pipeline_mode<synchronous>, transform_indices = @transform_4, window_bounds = array<i64: 1, 384>}, {pipeline_mode = #tpu.pipeline_mode<synchronous>, transform_indices = @transform_5, window_bounds = array<i64: 1, 128>}, {transform_indices = @transform_6, window_bounds = array<i64: 64, 128>}, {pipeline_mode = #tpu.pipeline_mode<synchronous>, transform_indices = @transform_7, window_bounds = array<i64: 8, 128>}]} {
    %c0_i32 = arith.constant 0 : i32
    %0 = arith.cmpi eq, %arg0, %c0_i32 : i32
    %1 = arith.extui %0 : i1 to i32
    %c0_i32_0 = arith.constant 0 : i32
    %2 = arith.cmpi ne, %1, %c0_i32_0 : i32
    scf.if %2 {
      %c0_105 = arith.constant 0 : index
      %c0_106 = arith.constant 0 : index
      %326 = vector.load %arg2[%c0_105, %c0_106] : memref<8x128xf32, #tpu.memory_space<vmem>>, vector<8x128xf32>
      %c0_107 = arith.constant 0 : index
      %c0_108 = arith.constant 0 : index
      %327 = vector.load %arg9[%c0_107, %c0_108] : memref<8x128xf32, #tpu.memory_space<vmem>>, vector<8x128xf32>
      tpu.vector_store %arg9[%c0_107, %c0_108], %326 {strides = array<i32>} : memref<8x128xf32, #tpu.memory_space<vmem>>, vector<8x128xf32>,
    } else {
    }
    %c0 = arith.constant 0 : index
    %c0_1 = arith.constant 0 : index
    %3 = vector.load %arg1[%c0, %c0_1] : memref<64x128xbf16, #tpu.memory_space<vmem>>, vector<64x128xbf16>
    %c0_2 = arith.constant 0 : index
    %c0_3 = arith.constant 0 : index
    %4 = vector.load %arg3[%c0_2, %c0_3] : memref<128x384xbf16, #tpu.memory_space<vmem>>, vector<128x384xbf16>
    %cst = arith.constant dense<0.000000e+00> : vector<64x384xf32>
    %5 = tpu.matmul %3, %4, %cst {dimension_numbers = #tpu.dot_dimension_numbers<[1], [0], [0], [1], [0, 0, 1, 1], [], []>} : vector<64x128xbf16>, vector<128x384xbf16>, vector<64x384xf32> -> vector<64x384xf32>
    %c0_4 = arith.constant 0 : index
    %c0_5 = arith.constant 0 : index
    %6 = vector.load %arg5[%c0_4, %c0_5] : memref<1x384xf32, #tpu.memory_space<vmem>>, vector<1x384xf32>
    %7 = vector.broadcast %6 : vector<1x384xf32> to vector<64x384xf32>
    %8 = arith.addf %5, %7 : vector<64x384xf32>
    %c0_6 = arith.constant 0 : index
    %c0_7 = arith.constant 0 : index
    %9 = vector.load %arg10[%c0_6, %c0_7] : memref<64x384xf32, #tpu.memory_space<vmem>>, vector<64x384xf32>
    tpu.vector_store %arg10[%c0_6, %c0_7], %8 {strides = array<i32>} : memref<64x384xf32, #tpu.memory_space<vmem>>, vector<64x384xf32>,
    %c0_8 = arith.constant 0 : index
    %c0_9 = arith.constant 0 : index
    %10 = vector.load %arg9[%c0_8, %c0_9] : memref<8x128xf32, #tpu.memory_space<vmem>>, vector<8x128xf32>
    %c0_i32_10 = arith.constant 0 : i32
    %c8_i32 = arith.constant 8 : i32
    %11 = arith.muli %c0_i32_10, %c8_i32 : i32
    %12 = tpu.assume_multiple %11, 8 : i32
    %13 = arith.index_cast %12 : i32 to index
    %c0_11 = arith.constant 0 : index
    %14 = vector.load %arg10[%13, %c0_11] : memref<64x384xf32, #tpu.memory_space<vmem>>, vector<8x384xf32>
    %15 = arith.truncf %10 : vector<8x128xf32> to vector<8x128xbf16>
    %c0_12 = arith.constant 0 : index
    %c0_13 = arith.constant 0 : index
    %16 = vector.load %arg4[%c0_12, %c0_13] : memref<128x384xbf16, #tpu.memory_space<vmem>>, vector<128x384xbf16>
    %cst_14 = arith.constant dense<0.000000e+00> : vector<8x384xf32>
    %17 = tpu.matmul %15, %16, %cst_14 {dimension_numbers = #tpu.dot_dimension_numbers<[1], [0], [0], [1], [0, 0, 1, 1], [], []>} : vector<8x128xbf16>, vector<128x384xbf16>, vector<8x384xf32> -> vector<8x384xf32>
    %18 = vector.extract_strided_slice %14 {offsets = [0, 0], sizes = [8, 128], strides = [1, 1]} : vector<8x384xf32> to vector<8x128xf32>
    %19 = vector.extract_strided_slice %17 {offsets = [0, 0], sizes = [8, 128], strides = [1, 1]} : vector<8x384xf32> to vector<8x128xf32>
    %20 = arith.addf %18, %19 : vector<8x128xf32>
    %21 = arith.negf %20 : vector<8x128xf32>
    %22 = math.exp %21 : vector<8x128xf32>
    %cst_15 = arith.constant 1.000000e+00 : f32
    %23 = vector.broadcast %cst_15 : f32 to vector<8x128xf32>
    %24 = arith.addf %23, %22 : vector<8x128xf32>
    %25 = arith.divf %23, %24 : vector<8x128xf32>
    %26 = vector.extract_strided_slice %14 {offsets = [0, 128], sizes = [8, 128], strides = [1, 1]} : vector<8x384xf32> to vector<8x128xf32>
    %27 = vector.extract_strided_slice %17 {offsets = [0, 128], sizes = [8, 128], strides = [1, 1]} : vector<8x384xf32> to vector<8x128xf32>
    %28 = arith.addf %26, %27 : vector<8x128xf32>
    %29 = arith.negf %28 : vector<8x128xf32>
    %30 = math.exp %29 : vector<8x128xf32>
    %cst_16 = arith.constant 1.000000e+00 : f32
    %31 = vector.broadcast %cst_16 : f32 to vector<8x128xf32>
    %32 = arith.addf %31, %30 : vector<8x128xf32>
    %33 = arith.divf %31, %32 : vector<8x128xf32>
    %34 = vector.extract_strided_slice %14 {offsets = [0, 256], sizes = [8, 128], strides = [1, 1]} : vector<8x384xf32> to vector<8x128xf32>
    %35 = vector.extract_strided_slice %17 {offsets = [0, 256], sizes = [8, 128], strides = [1, 1]} : vector<8x384xf32> to vector<8x128xf32>
    %c0_17 = arith.constant 0 : index
    %c0_18 = arith.constant 0 : index
    %36 = vector.load %arg6[%c0_17, %c0_18] : memref<1x128xf32, #tpu.memory_space<vmem>>, vector<1x128xf32>
    %37 = vector.broadcast %36 : vector<1x128xf32> to vector<8x128xf32>
    %38 = arith.addf %35, %37 : vector<8x128xf32>
    %39 = arith.mulf %25, %38 : vector<8x128xf32>
    %40 = arith.addf %34, %39 : vector<8x128xf32>
    %41 = math.tanh %40 : vector<8x128xf32>
    %cst_19 = arith.constant 1.000000e+00 : f32
    %42 = vector.broadcast %cst_19 : f32 to vector<8x128xf32>
    %43 = arith.subf %42, %33 : vector<8x128xf32>
    %44 = arith.mulf %43, %41 : vector<8x128xf32>
    %45 = arith.mulf %33, %10 : vector<8x128xf32>
    %46 = arith.addf %44, %45 : vector<8x128xf32>
    %47 = arith.truncf %46 : vector<8x128xf32> to vector<8x128xbf16>
    %48 = arith.index_cast %12 : i32 to index
    %c0_20 = arith.constant 0 : index
    %49 = vector.load %arg7[%48, %c0_20] : memref<64x128xbf16, #tpu.memory_space<vmem>>, vector<8x128xbf16>
    tpu.vector_store %arg7[%48, %c0_20], %47 {strides = array<i32>} : memref<64x128xbf16, #tpu.memory_space<vmem>>, vector<8x128xbf16>,
    %c1_i32 = arith.constant 1 : i32
    %c8_i32_21 = arith.constant 8 : i32
    %50 = arith.muli %c1_i32, %c8_i32_21 : i32
    %51 = tpu.assume_multiple %50, 8 : i32
    %52 = arith.index_cast %51 : i32 to index
    %c0_22 = arith.constant 0 : index
    %53 = vector.load %arg10[%52, %c0_22] : memref<64x384xf32, #tpu.memory_space<vmem>>, vector<8x384xf32>
    %54 = arith.truncf %46 : vector<8x128xf32> to vector<8x128xbf16>
    %c0_23 = arith.constant 0 : index
    %c0_24 = arith.constant 0 : index
    %55 = vector.load %arg4[%c0_23, %c0_24] : memref<128x384xbf16, #tpu.memory_space<vmem>>, vector<128x384xbf16>
    %cst_25 = arith.constant dense<0.000000e+00> : vector<8x384xf32>
    %56 = tpu.matmul %54, %55, %cst_25 {dimension_numbers = #tpu.dot_dimension_numbers<[1], [0], [0], [1], [0, 0, 1, 1], [], []>} : vector<8x128xbf16>, vector<128x384xbf16>, vector<8x384xf32> -> vector<8x384xf32>
    %57 = vector.extract_strided_slice %53 {offsets = [0, 0], sizes = [8, 128], strides = [1, 1]} : vector<8x384xf32> to vector<8x128xf32>
    %58 = vector.extract_strided_slice %56 {offsets = [0, 0], sizes = [8, 128], strides = [1, 1]} : vector<8x384xf32> to vector<8x128xf32>
    %59 = arith.addf %57, %58 : vector<8x128xf32>
    %60 = arith.negf %59 : vector<8x128xf32>
    %61 = math.exp %60 : vector<8x128xf32>
    %cst_26 = arith.constant 1.000000e+00 : f32
    %62 = vector.broadcast %cst_26 : f32 to vector<8x128xf32>
    %63 = arith.addf %62, %61 : vector<8x128xf32>
    %64 = arith.divf %62, %63 : vector<8x128xf32>
    %65 = vector.extract_strided_slice %53 {offsets = [0, 128], sizes = [8, 128], strides = [1, 1]} : vector<8x384xf32> to vector<8x128xf32>
    %66 = vector.extract_strided_slice %56 {offsets = [0, 128], sizes = [8, 128], strides = [1, 1]} : vector<8x384xf32> to vector<8x128xf32>
    %67 = arith.addf %65, %66 : vector<8x128xf32>
    %68 = arith.negf %67 : vector<8x128xf32>
    %69 = math.exp %68 : vector<8x128xf32>
    %cst_27 = arith.constant 1.000000e+00 : f32
    %70 = vector.broadcast %cst_27 : f32 to vector<8x128xf32>
    %71 = arith.addf %70, %69 : vector<8x128xf32>
    %72 = arith.divf %70, %71 : vector<8x128xf32>
    %73 = vector.extract_strided_slice %53 {offsets = [0, 256], sizes = [8, 128], strides = [1, 1]} : vector<8x384xf32> to vector<8x128xf32>
    %74 = vector.extract_strided_slice %56 {offsets = [0, 256], sizes = [8, 128], strides = [1, 1]} : vector<8x384xf32> to vector<8x128xf32>
    %c0_28 = arith.constant 0 : index
    %c0_29 = arith.constant 0 : index
    %75 = vector.load %arg6[%c0_28, %c0_29] : memref<1x128xf32, #tpu.memory_space<vmem>>, vector<1x128xf32>
    %76 = vector.broadcast %75 : vector<1x128xf32> to vector<8x128xf32>
    %77 = arith.addf %74, %76 : vector<8x128xf32>
    %78 = arith.mulf %64, %77 : vector<8x128xf32>
    %79 = arith.addf %73, %78 : vector<8x128xf32>
    %80 = math.tanh %79 : vector<8x128xf32>
    %cst_30 = arith.constant 1.000000e+00 : f32
    %81 = vector.broadcast %cst_30 : f32 to vector<8x128xf32>
    %82 = arith.subf %81, %72 : vector<8x128xf32>
    %83 = arith.mulf %82, %80 : vector<8x128xf32>
    %84 = arith.mulf %72, %46 : vector<8x128xf32>
    %85 = arith.addf %83, %84 : vector<8x128xf32>
    %86 = arith.truncf %85 : vector<8x128xf32> to vector<8x128xbf16>
    %87 = arith.index_cast %51 : i32 to index
    %c0_31 = arith.constant 0 : index
    %88 = vector.load %arg7[%87, %c0_31] : memref<64x128xbf16, #tpu.memory_space<vmem>>, vector<8x128xbf16>
    tpu.vector_store %arg7[%87, %c0_31], %86 {strides = array<i32>} : memref<64x128xbf16, #tpu.memory_space<vmem>>, vector<8x128xbf16>,
    %c2_i32 = arith.constant 2 : i32
    %c8_i32_32 = arith.constant 8 : i32
    %89 = arith.muli %c2_i32, %c8_i32_32 : i32
    %90 = tpu.assume_multiple %89, 8 : i32
    %91 = arith.index_cast %90 : i32 to index
    %c0_33 = arith.constant 0 : index
    %92 = vector.load %arg10[%91, %c0_33] : memref<64x384xf32, #tpu.memory_space<vmem>>, vector<8x384xf32>
    %93 = arith.truncf %85 : vector<8x128xf32> to vector<8x128xbf16>
    %c0_34 = arith.constant 0 : index
    %c0_35 = arith.constant 0 : index
    %94 = vector.load %arg4[%c0_34, %c0_35] : memref<128x384xbf16, #tpu.memory_space<vmem>>, vector<128x384xbf16>
    %cst_36 = arith.constant dense<0.000000e+00> : vector<8x384xf32>
    %95 = tpu.matmul %93, %94, %cst_36 {dimension_numbers = #tpu.dot_dimension_numbers<[1], [0], [0], [1], [0, 0, 1, 1], [], []>} : vector<8x128xbf16>, vector<128x384xbf16>, vector<8x384xf32> -> vector<8x384xf32>
    %96 = vector.extract_strided_slice %92 {offsets = [0, 0], sizes = [8, 128], strides = [1, 1]} : vector<8x384xf32> to vector<8x128xf32>
    %97 = vector.extract_strided_slice %95 {offsets = [0, 0], sizes = [8, 128], strides = [1, 1]} : vector<8x384xf32> to vector<8x128xf32>
    %98 = arith.addf %96, %97 : vector<8x128xf32>
    %99 = arith.negf %98 : vector<8x128xf32>
    %100 = math.exp %99 : vector<8x128xf32>
    %cst_37 = arith.constant 1.000000e+00 : f32
    %101 = vector.broadcast %cst_37 : f32 to vector<8x128xf32>
    %102 = arith.addf %101, %100 : vector<8x128xf32>
    %103 = arith.divf %101, %102 : vector<8x128xf32>
    %104 = vector.extract_strided_slice %92 {offsets = [0, 128], sizes = [8, 128], strides = [1, 1]} : vector<8x384xf32> to vector<8x128xf32>
    %105 = vector.extract_strided_slice %95 {offsets = [0, 128], sizes = [8, 128], strides = [1, 1]} : vector<8x384xf32> to vector<8x128xf32>
    %106 = arith.addf %104, %105 : vector<8x128xf32>
    %107 = arith.negf %106 : vector<8x128xf32>
    %108 = math.exp %107 : vector<8x128xf32>
    %cst_38 = arith.constant 1.000000e+00 : f32
    %109 = vector.broadcast %cst_38 : f32 to vector<8x128xf32>
    %110 = arith.addf %109, %108 : vector<8x128xf32>
    %111 = arith.divf %109, %110 : vector<8x128xf32>
    %112 = vector.extract_strided_slice %92 {offsets = [0, 256], sizes = [8, 128], strides = [1, 1]} : vector<8x384xf32> to vector<8x128xf32>
    %113 = vector.extract_strided_slice %95 {offsets = [0, 256], sizes = [8, 128], strides = [1, 1]} : vector<8x384xf32> to vector<8x128xf32>
    %c0_39 = arith.constant 0 : index
    %c0_40 = arith.constant 0 : index
    %114 = vector.load %arg6[%c0_39, %c0_40] : memref<1x128xf32, #tpu.memory_space<vmem>>, vector<1x128xf32>
    %115 = vector.broadcast %114 : vector<1x128xf32> to vector<8x128xf32>
    %116 = arith.addf %113, %115 : vector<8x128xf32>
    %117 = arith.mulf %103, %116 : vector<8x128xf32>
    %118 = arith.addf %112, %117 : vector<8x128xf32>
    %119 = math.tanh %118 : vector<8x128xf32>
    %cst_41 = arith.constant 1.000000e+00 : f32
    %120 = vector.broadcast %cst_41 : f32 to vector<8x128xf32>
    %121 = arith.subf %120, %111 : vector<8x128xf32>
    %122 = arith.mulf %121, %119 : vector<8x128xf32>
    %123 = arith.mulf %111, %85 : vector<8x128xf32>
    %124 = arith.addf %122, %123 : vector<8x128xf32>
    %125 = arith.truncf %124 : vector<8x128xf32> to vector<8x128xbf16>
    %126 = arith.index_cast %90 : i32 to index
    %c0_42 = arith.constant 0 : index
    %127 = vector.load %arg7[%126, %c0_42] : memref<64x128xbf16, #tpu.memory_space<vmem>>, vector<8x128xbf16>
    tpu.vector_store %arg7[%126, %c0_42], %125 {strides = array<i32>} : memref<64x128xbf16, #tpu.memory_space<vmem>>, vector<8x128xbf16>,
    %c3_i32 = arith.constant 3 : i32
    %c8_i32_43 = arith.constant 8 : i32
    %128 = arith.muli %c3_i32, %c8_i32_43 : i32
    %129 = tpu.assume_multiple %128, 8 : i32
    %130 = arith.index_cast %129 : i32 to index
    %c0_44 = arith.constant 0 : index
    %131 = vector.load %arg10[%130, %c0_44] : memref<64x384xf32, #tpu.memory_space<vmem>>, vector<8x384xf32>
    %132 = arith.truncf %124 : vector<8x128xf32> to vector<8x128xbf16>
    %c0_45 = arith.constant 0 : index
    %c0_46 = arith.constant 0 : index
    %133 = vector.load %arg4[%c0_45, %c0_46] : memref<128x384xbf16, #tpu.memory_space<vmem>>, vector<128x384xbf16>
    %cst_47 = arith.constant dense<0.000000e+00> : vector<8x384xf32>
    %134 = tpu.matmul %132, %133, %cst_47 {dimension_numbers = #tpu.dot_dimension_numbers<[1], [0], [0], [1], [0, 0, 1, 1], [], []>} : vector<8x128xbf16>, vector<128x384xbf16>, vector<8x384xf32> -> vector<8x384xf32>
    %135 = vector.extract_strided_slice %131 {offsets = [0, 0], sizes = [8, 128], strides = [1, 1]} : vector<8x384xf32> to vector<8x128xf32>
    %136 = vector.extract_strided_slice %134 {offsets = [0, 0], sizes = [8, 128], strides = [1, 1]} : vector<8x384xf32> to vector<8x128xf32>
    %137 = arith.addf %135, %136 : vector<8x128xf32>
    %138 = arith.negf %137 : vector<8x128xf32>
    %139 = math.exp %138 : vector<8x128xf32>
    %cst_48 = arith.constant 1.000000e+00 : f32
    %140 = vector.broadcast %cst_48 : f32 to vector<8x128xf32>
    %141 = arith.addf %140, %139 : vector<8x128xf32>
    %142 = arith.divf %140, %141 : vector<8x128xf32>
    %143 = vector.extract_strided_slice %131 {offsets = [0, 128], sizes = [8, 128], strides = [1, 1]} : vector<8x384xf32> to vector<8x128xf32>
    %144 = vector.extract_strided_slice %134 {offsets = [0, 128], sizes = [8, 128], strides = [1, 1]} : vector<8x384xf32> to vector<8x128xf32>
    %145 = arith.addf %143, %144 : vector<8x128xf32>
    %146 = arith.negf %145 : vector<8x128xf32>
    %147 = math.exp %146 : vector<8x128xf32>
    %cst_49 = arith.constant 1.000000e+00 : f32
    %148 = vector.broadcast %cst_49 : f32 to vector<8x128xf32>
    %149 = arith.addf %148, %147 : vector<8x128xf32>
    %150 = arith.divf %148, %149 : vector<8x128xf32>
    %151 = vector.extract_strided_slice %131 {offsets = [0, 256], sizes = [8, 128], strides = [1, 1]} : vector<8x384xf32> to vector<8x128xf32>
    %152 = vector.extract_strided_slice %134 {offsets = [0, 256], sizes = [8, 128], strides = [1, 1]} : vector<8x384xf32> to vector<8x128xf32>
    %c0_50 = arith.constant 0 : index
    %c0_51 = arith.constant 0 : index
    %153 = vector.load %arg6[%c0_50, %c0_51] : memref<1x128xf32, #tpu.memory_space<vmem>>, vector<1x128xf32>
    %154 = vector.broadcast %153 : vector<1x128xf32> to vector<8x128xf32>
    %155 = arith.addf %152, %154 : vector<8x128xf32>
    %156 = arith.mulf %142, %155 : vector<8x128xf32>
    %157 = arith.addf %151, %156 : vector<8x128xf32>
    %158 = math.tanh %157 : vector<8x128xf32>
    %cst_52 = arith.constant 1.000000e+00 : f32
    %159 = vector.broadcast %cst_52 : f32 to vector<8x128xf32>
    %160 = arith.subf %159, %150 : vector<8x128xf32>
    %161 = arith.mulf %160, %158 : vector<8x128xf32>
    %162 = arith.mulf %150, %124 : vector<8x128xf32>
    %163 = arith.addf %161, %162 : vector<8x128xf32>
    %164 = arith.truncf %163 : vector<8x128xf32> to vector<8x128xbf16>
    %165 = arith.index_cast %129 : i32 to index
    %c0_53 = arith.constant 0 : index
    %166 = vector.load %arg7[%165, %c0_53] : memref<64x128xbf16, #tpu.memory_space<vmem>>, vector<8x128xbf16>
    tpu.vector_store %arg7[%165, %c0_53], %164 {strides = array<i32>} : memref<64x128xbf16, #tpu.memory_space<vmem>>, vector<8x128xbf16>,
    %c4_i32 = arith.constant 4 : i32
    %c8_i32_54 = arith.constant 8 : i32
    %167 = arith.muli %c4_i32, %c8_i32_54 : i32
    %168 = tpu.assume_multiple %167, 8 : i32
    %169 = arith.index_cast %168 : i32 to index
    %c0_55 = arith.constant 0 : index
    %170 = vector.load %arg10[%169, %c0_55] : memref<64x384xf32, #tpu.memory_space<vmem>>, vector<8x384xf32>
    %171 = arith.truncf %163 : vector<8x128xf32> to vector<8x128xbf16>
    %c0_56 = arith.constant 0 : index
    %c0_57 = arith.constant 0 : index
    %172 = vector.load %arg4[%c0_56, %c0_57] : memref<128x384xbf16, #tpu.memory_space<vmem>>, vector<128x384xbf16>
    %cst_58 = arith.constant dense<0.000000e+00> : vector<8x384xf32>
    %173 = tpu.matmul %171, %172, %cst_58 {dimension_numbers = #tpu.dot_dimension_numbers<[1], [0], [0], [1], [0, 0, 1, 1], [], []>} : vector<8x128xbf16>, vector<128x384xbf16>, vector<8x384xf32> -> vector<8x384xf32>
    %174 = vector.extract_strided_slice %170 {offsets = [0, 0], sizes = [8, 128], strides = [1, 1]} : vector<8x384xf32> to vector<8x128xf32>
    %175 = vector.extract_strided_slice %173 {offsets = [0, 0], sizes = [8, 128], strides = [1, 1]} : vector<8x384xf32> to vector<8x128xf32>
    %176 = arith.addf %174, %175 : vector<8x128xf32>
    %177 = arith.negf %176 : vector<8x128xf32>
    %178 = math.exp %177 : vector<8x128xf32>
    %cst_59 = arith.constant 1.000000e+00 : f32
    %179 = vector.broadcast %cst_59 : f32 to vector<8x128xf32>
    %180 = arith.addf %179, %178 : vector<8x128xf32>
    %181 = arith.divf %179, %180 : vector<8x128xf32>
    %182 = vector.extract_strided_slice %170 {offsets = [0, 128], sizes = [8, 128], strides = [1, 1]} : vector<8x384xf32> to vector<8x128xf32>
    %183 = vector.extract_strided_slice %173 {offsets = [0, 128], sizes = [8, 128], strides = [1, 1]} : vector<8x384xf32> to vector<8x128xf32>
    %184 = arith.addf %182, %183 : vector<8x128xf32>
    %185 = arith.negf %184 : vector<8x128xf32>
    %186 = math.exp %185 : vector<8x128xf32>
    %cst_60 = arith.constant 1.000000e+00 : f32
    %187 = vector.broadcast %cst_60 : f32 to vector<8x128xf32>
    %188 = arith.addf %187, %186 : vector<8x128xf32>
    %189 = arith.divf %187, %188 : vector<8x128xf32>
    %190 = vector.extract_strided_slice %170 {offsets = [0, 256], sizes = [8, 128], strides = [1, 1]} : vector<8x384xf32> to vector<8x128xf32>
    %191 = vector.extract_strided_slice %173 {offsets = [0, 256], sizes = [8, 128], strides = [1, 1]} : vector<8x384xf32> to vector<8x128xf32>
    %c0_61 = arith.constant 0 : index
    %c0_62 = arith.constant 0 : index
    %192 = vector.load %arg6[%c0_61, %c0_62] : memref<1x128xf32, #tpu.memory_space<vmem>>, vector<1x128xf32>
    %193 = vector.broadcast %192 : vector<1x128xf32> to vector<8x128xf32>
    %194 = arith.addf %191, %193 : vector<8x128xf32>
    %195 = arith.mulf %181, %194 : vector<8x128xf32>
    %196 = arith.addf %190, %195 : vector<8x128xf32>
    %197 = math.tanh %196 : vector<8x128xf32>
    %cst_63 = arith.constant 1.000000e+00 : f32
    %198 = vector.broadcast %cst_63 : f32 to vector<8x128xf32>
    %199 = arith.subf %198, %189 : vector<8x128xf32>
    %200 = arith.mulf %199, %197 : vector<8x128xf32>
    %201 = arith.mulf %189, %163 : vector<8x128xf32>
    %202 = arith.addf %200, %201 : vector<8x128xf32>
    %203 = arith.truncf %202 : vector<8x128xf32> to vector<8x128xbf16>
    %204 = arith.index_cast %168 : i32 to index
    %c0_64 = arith.constant 0 : index
    %205 = vector.load %arg7[%204, %c0_64] : memref<64x128xbf16, #tpu.memory_space<vmem>>, vector<8x128xbf16>
    tpu.vector_store %arg7[%204, %c0_64], %203 {strides = array<i32>} : memref<64x128xbf16, #tpu.memory_space<vmem>>, vector<8x128xbf16>,
    %c5_i32 = arith.constant 5 : i32
    %c8_i32_65 = arith.constant 8 : i32
    %206 = arith.muli %c5_i32, %c8_i32_65 : i32
    %207 = tpu.assume_multiple %206, 8 : i32
    %208 = arith.index_cast %207 : i32 to index
    %c0_66 = arith.constant 0 : index
    %209 = vector.load %arg10[%208, %c0_66] : memref<64x384xf32, #tpu.memory_space<vmem>>, vector<8x384xf32>
    %210 = arith.truncf %202 : vector<8x128xf32> to vector<8x128xbf16>
    %c0_67 = arith.constant 0 : index
    %c0_68 = arith.constant 0 : index
    %211 = vector.load %arg4[%c0_67, %c0_68] : memref<128x384xbf16, #tpu.memory_space<vmem>>, vector<128x384xbf16>
    %cst_69 = arith.constant dense<0.000000e+00> : vector<8x384xf32>
    %212 = tpu.matmul %210, %211, %cst_69 {dimension_numbers = #tpu.dot_dimension_numbers<[1], [0], [0], [1], [0, 0, 1, 1], [], []>} : vector<8x128xbf16>, vector<128x384xbf16>, vector<8x384xf32> -> vector<8x384xf32>
    %213 = vector.extract_strided_slice %209 {offsets = [0, 0], sizes = [8, 128], strides = [1, 1]} : vector<8x384xf32> to vector<8x128xf32>
    %214 = vector.extract_strided_slice %212 {offsets = [0, 0], sizes = [8, 128], strides = [1, 1]} : vector<8x384xf32> to vector<8x128xf32>
    %215 = arith.addf %213, %214 : vector<8x128xf32>
    %216 = arith.negf %215 : vector<8x128xf32>
    %217 = math.exp %216 : vector<8x128xf32>
    %cst_70 = arith.constant 1.000000e+00 : f32
    %218 = vector.broadcast %cst_70 : f32 to vector<8x128xf32>
    %219 = arith.addf %218, %217 : vector<8x128xf32>
    %220 = arith.divf %218, %219 : vector<8x128xf32>
    %221 = vector.extract_strided_slice %209 {offsets = [0, 128], sizes = [8, 128], strides = [1, 1]} : vector<8x384xf32> to vector<8x128xf32>
    %222 = vector.extract_strided_slice %212 {offsets = [0, 128], sizes = [8, 128], strides = [1, 1]} : vector<8x384xf32> to vector<8x128xf32>
    %223 = arith.addf %221, %222 : vector<8x128xf32>
    %224 = arith.negf %223 : vector<8x128xf32>
    %225 = math.exp %224 : vector<8x128xf32>
    %cst_71 = arith.constant 1.000000e+00 : f32
    %226 = vector.broadcast %cst_71 : f32 to vector<8x128xf32>
    %227 = arith.addf %226, %225 : vector<8x128xf32>
    %228 = arith.divf %226, %227 : vector<8x128xf32>
    %229 = vector.extract_strided_slice %209 {offsets = [0, 256], sizes = [8, 128], strides = [1, 1]} : vector<8x384xf32> to vector<8x128xf32>
    %230 = vector.extract_strided_slice %212 {offsets = [0, 256], sizes = [8, 128], strides = [1, 1]} : vector<8x384xf32> to vector<8x128xf32>
    %c0_72 = arith.constant 0 : index
    %c0_73 = arith.constant 0 : index
    %231 = vector.load %arg6[%c0_72, %c0_73] : memref<1x128xf32, #tpu.memory_space<vmem>>, vector<1x128xf32>
    %232 = vector.broadcast %231 : vector<1x128xf32> to vector<8x128xf32>
    %233 = arith.addf %230, %232 : vector<8x128xf32>
    %234 = arith.mulf %220, %233 : vector<8x128xf32>
    %235 = arith.addf %229, %234 : vector<8x128xf32>
    %236 = math.tanh %235 : vector<8x128xf32>
    %cst_74 = arith.constant 1.000000e+00 : f32
    %237 = vector.broadcast %cst_74 : f32 to vector<8x128xf32>
    %238 = arith.subf %237, %228 : vector<8x128xf32>
    %239 = arith.mulf %238, %236 : vector<8x128xf32>
    %240 = arith.mulf %228, %202 : vector<8x128xf32>
    %241 = arith.addf %239, %240 : vector<8x128xf32>
    %242 = arith.truncf %241 : vector<8x128xf32> to vector<8x128xbf16>
    %243 = arith.index_cast %207 : i32 to index
    %c0_75 = arith.constant 0 : index
    %244 = vector.load %arg7[%243, %c0_75] : memref<64x128xbf16, #tpu.memory_space<vmem>>, vector<8x128xbf16>
    tpu.vector_store %arg7[%243, %c0_75], %242 {strides = array<i32>} : memref<64x128xbf16, #tpu.memory_space<vmem>>, vector<8x128xbf16>,
    %c6_i32 = arith.constant 6 : i32
    %c8_i32_76 = arith.constant 8 : i32
    %245 = arith.muli %c6_i32, %c8_i32_76 : i32
    %246 = tpu.assume_multiple %245, 8 : i32
    %247 = arith.index_cast %246 : i32 to index
    %c0_77 = arith.constant 0 : index
    %248 = vector.load %arg10[%247, %c0_77] : memref<64x384xf32, #tpu.memory_space<vmem>>, vector<8x384xf32>
    %249 = arith.truncf %241 : vector<8x128xf32> to vector<8x128xbf16>
    %c0_78 = arith.constant 0 : index
    %c0_79 = arith.constant 0 : index
    %250 = vector.load %arg4[%c0_78, %c0_79] : memref<128x384xbf16, #tpu.memory_space<vmem>>, vector<128x384xbf16>
    %cst_80 = arith.constant dense<0.000000e+00> : vector<8x384xf32>
    %251 = tpu.matmul %249, %250, %cst_80 {dimension_numbers = #tpu.dot_dimension_numbers<[1], [0], [0], [1], [0, 0, 1, 1], [], []>} : vector<8x128xbf16>, vector<128x384xbf16>, vector<8x384xf32> -> vector<8x384xf32>
    %252 = vector.extract_strided_slice %248 {offsets = [0, 0], sizes = [8, 128], strides = [1, 1]} : vector<8x384xf32> to vector<8x128xf32>
    %253 = vector.extract_strided_slice %251 {offsets = [0, 0], sizes = [8, 128], strides = [1, 1]} : vector<8x384xf32> to vector<8x128xf32>
    %254 = arith.addf %252, %253 : vector<8x128xf32>
    %255 = arith.negf %254 : vector<8x128xf32>
    %256 = math.exp %255 : vector<8x128xf32>
    %cst_81 = arith.constant 1.000000e+00 : f32
    %257 = vector.broadcast %cst_81 : f32 to vector<8x128xf32>
    %258 = arith.addf %257, %256 : vector<8x128xf32>
    %259 = arith.divf %257, %258 : vector<8x128xf32>
    %260 = vector.extract_strided_slice %248 {offsets = [0, 128], sizes = [8, 128], strides = [1, 1]} : vector<8x384xf32> to vector<8x128xf32>
    %261 = vector.extract_strided_slice %251 {offsets = [0, 128], sizes = [8, 128], strides = [1, 1]} : vector<8x384xf32> to vector<8x128xf32>
    %262 = arith.addf %260, %261 : vector<8x128xf32>
    %263 = arith.negf %262 : vector<8x128xf32>
    %264 = math.exp %263 : vector<8x128xf32>
    %cst_82 = arith.constant 1.000000e+00 : f32
    %265 = vector.broadcast %cst_82 : f32 to vector<8x128xf32>
    %266 = arith.addf %265, %264 : vector<8x128xf32>
    %267 = arith.divf %265, %266 : vector<8x128xf32>
    %268 = vector.extract_strided_slice %248 {offsets = [0, 256], sizes = [8, 128], strides = [1, 1]} : vector<8x384xf32> to vector<8x128xf32>
    %269 = vector.extract_strided_slice %251 {offsets = [0, 256], sizes = [8, 128], strides = [1, 1]} : vector<8x384xf32> to vector<8x128xf32>
    %c0_83 = arith.constant 0 : index
    %c0_84 = arith.constant 0 : index
    %270 = vector.load %arg6[%c0_83, %c0_84] : memref<1x128xf32, #tpu.memory_space<vmem>>, vector<1x128xf32>
    %271 = vector.broadcast %270 : vector<1x128xf32> to vector<8x128xf32>
    %272 = arith.addf %269, %271 : vector<8x128xf32>
    %273 = arith.mulf %259, %272 : vector<8x128xf32>
    %274 = arith.addf %268, %273 : vector<8x128xf32>
    %275 = math.tanh %274 : vector<8x128xf32>
    %cst_85 = arith.constant 1.000000e+00 : f32
    %276 = vector.broadcast %cst_85 : f32 to vector<8x128xf32>
    %277 = arith.subf %276, %267 : vector<8x128xf32>
    %278 = arith.mulf %277, %275 : vector<8x128xf32>
    %279 = arith.mulf %267, %241 : vector<8x128xf32>
    %280 = arith.addf %278, %279 : vector<8x128xf32>
    %281 = arith.truncf %280 : vector<8x128xf32> to vector<8x128xbf16>
    %282 = arith.index_cast %246 : i32 to index
    %c0_86 = arith.constant 0 : index
    %283 = vector.load %arg7[%282, %c0_86] : memref<64x128xbf16, #tpu.memory_space<vmem>>, vector<8x128xbf16>
    tpu.vector_store %arg7[%282, %c0_86], %281 {strides = array<i32>} : memref<64x128xbf16, #tpu.memory_space<vmem>>, vector<8x128xbf16>,
    %c7_i32 = arith.constant 7 : i32
    %c8_i32_87 = arith.constant 8 : i32
    %284 = arith.muli %c7_i32, %c8_i32_87 : i32
    %285 = tpu.assume_multiple %284, 8 : i32
    %286 = arith.index_cast %285 : i32 to index
    %c0_88 = arith.constant 0 : index
    %287 = vector.load %arg10[%286, %c0_88] : memref<64x384xf32, #tpu.memory_space<vmem>>, vector<8x384xf32>
    %288 = arith.truncf %280 : vector<8x128xf32> to vector<8x128xbf16>
    %c0_89 = arith.constant 0 : index
    %c0_90 = arith.constant 0 : index
    %289 = vector.load %arg4[%c0_89, %c0_90] : memref<128x384xbf16, #tpu.memory_space<vmem>>, vector<128x384xbf16>
    %cst_91 = arith.constant dense<0.000000e+00> : vector<8x384xf32>
    %290 = tpu.matmul %288, %289, %cst_91 {dimension_numbers = #tpu.dot_dimension_numbers<[1], [0], [0], [1], [0, 0, 1, 1], [], []>} : vector<8x128xbf16>, vector<128x384xbf16>, vector<8x384xf32> -> vector<8x384xf32>
    %291 = vector.extract_strided_slice %287 {offsets = [0, 0], sizes = [8, 128], strides = [1, 1]} : vector<8x384xf32> to vector<8x128xf32>
    %292 = vector.extract_strided_slice %290 {offsets = [0, 0], sizes = [8, 128], strides = [1, 1]} : vector<8x384xf32> to vector<8x128xf32>
    %293 = arith.addf %291, %292 : vector<8x128xf32>
    %294 = arith.negf %293 : vector<8x128xf32>
    %295 = math.exp %294 : vector<8x128xf32>
    %cst_92 = arith.constant 1.000000e+00 : f32
    %296 = vector.broadcast %cst_92 : f32 to vector<8x128xf32>
    %297 = arith.addf %296, %295 : vector<8x128xf32>
    %298 = arith.divf %296, %297 : vector<8x128xf32>
    %299 = vector.extract_strided_slice %287 {offsets = [0, 128], sizes = [8, 128], strides = [1, 1]} : vector<8x384xf32> to vector<8x128xf32>
    %300 = vector.extract_strided_slice %290 {offsets = [0, 128], sizes = [8, 128], strides = [1, 1]} : vector<8x384xf32> to vector<8x128xf32>
    %301 = arith.addf %299, %300 : vector<8x128xf32>
    %302 = arith.negf %301 : vector<8x128xf32>
    %303 = math.exp %302 : vector<8x128xf32>
    %cst_93 = arith.constant 1.000000e+00 : f32
    %304 = vector.broadcast %cst_93 : f32 to vector<8x128xf32>
    %305 = arith.addf %304, %303 : vector<8x128xf32>
    %306 = arith.divf %304, %305 : vector<8x128xf32>
    %307 = vector.extract_strided_slice %287 {offsets = [0, 256], sizes = [8, 128], strides = [1, 1]} : vector<8x384xf32> to vector<8x128xf32>
    %308 = vector.extract_strided_slice %290 {offsets = [0, 256], sizes = [8, 128], strides = [1, 1]} : vector<8x384xf32> to vector<8x128xf32>
    %c0_94 = arith.constant 0 : index
    %c0_95 = arith.constant 0 : index
    %309 = vector.load %arg6[%c0_94, %c0_95] : memref<1x128xf32, #tpu.memory_space<vmem>>, vector<1x128xf32>
    %310 = vector.broadcast %309 : vector<1x128xf32> to vector<8x128xf32>
    %311 = arith.addf %308, %310 : vector<8x128xf32>
    %312 = arith.mulf %298, %311 : vector<8x128xf32>
    %313 = arith.addf %307, %312 : vector<8x128xf32>
    %314 = math.tanh %313 : vector<8x128xf32>
    %cst_96 = arith.constant 1.000000e+00 : f32
    %315 = vector.broadcast %cst_96 : f32 to vector<8x128xf32>
    %316 = arith.subf %315, %306 : vector<8x128xf32>
    %317 = arith.mulf %316, %314 : vector<8x128xf32>
    %318 = arith.mulf %306, %280 : vector<8x128xf32>
    %319 = arith.addf %317, %318 : vector<8x128xf32>
    %320 = arith.truncf %319 : vector<8x128xf32> to vector<8x128xbf16>
    %321 = arith.index_cast %285 : i32 to index
    %c0_97 = arith.constant 0 : index
    %322 = vector.load %arg7[%321, %c0_97] : memref<64x128xbf16, #tpu.memory_space<vmem>>, vector<8x128xbf16>
    tpu.vector_store %arg7[%321, %c0_97], %320 {strides = array<i32>} : memref<64x128xbf16, #tpu.memory_space<vmem>>, vector<8x128xbf16>,
    %c8_i32_98 = arith.constant 8 : i32
    %c0_99 = arith.constant 0 : index
    %c0_100 = arith.constant 0 : index
    %323 = vector.load %arg9[%c0_99, %c0_100] : memref<8x128xf32, #tpu.memory_space<vmem>>, vector<8x128xf32>
    tpu.vector_store %arg9[%c0_99, %c0_100], %319 {strides = array<i32>} : memref<8x128xf32, #tpu.memory_space<vmem>>, vector<8x128xf32>,
    %c0_101 = arith.constant 0 : index
    %c0_102 = arith.constant 0 : index
    %324 = vector.load %arg9[%c0_101, %c0_102] : memref<8x128xf32, #tpu.memory_space<vmem>>, vector<8x128xf32>
    %c0_103 = arith.constant 0 : index
    %c0_104 = arith.constant 0 : index
    %325 = vector.load %arg8[%c0_103, %c0_104] : memref<8x128xf32, #tpu.memory_space<vmem>>, vector<8x128xf32>
    tpu.vector_store %arg8[%c0_103, %c0_104], %324 {strides = array<i32>} : memref<8x128xf32, #tpu.memory_space<vmem>>, vector<8x128xf32>,
    return
  }
  func.func @transform_0(%arg0: i32) -> (i32, i32) {
    %c0_i32 = arith.constant 0 : i32
    %c0_i32_0 = arith.constant 0 : i32
    return %arg0, %c0_i32 : i32, i32
  }
  func.func @transform_1(%arg0: i32) -> (i32, i32) {
    %c0_i32 = arith.constant 0 : i32
    %c0_i32_0 = arith.constant 0 : i32
    %c0_i32_1 = arith.constant 0 : i32
    return %c0_i32, %c0_i32_0 : i32, i32
  }
  func.func @transform_2(%arg0: i32) -> (i32, i32) {
    %c0_i32 = arith.constant 0 : i32
    %c0_i32_0 = arith.constant 0 : i32
    %c0_i32_1 = arith.constant 0 : i32
    return %c0_i32, %c0_i32_0 : i32, i32
  }
  func.func @transform_3(%arg0: i32) -> (i32, i32) {
    %c0_i32 = arith.constant 0 : i32
    %c0_i32_0 = arith.constant 0 : i32
    %c0_i32_1 = arith.constant 0 : i32
    return %c0_i32, %c0_i32_0 : i32, i32
  }
  func.func @transform_4(%arg0: i32) -> (i32, i32) {
    %c0_i32 = arith.constant 0 : i32
    %c0_i32_0 = arith.constant 0 : i32
    %c0_i32_1 = arith.constant 0 : i32
    return %c0_i32, %c0_i32_0 : i32, i32
  }
  func.func @transform_5(%arg0: i32) -> (i32, i32) {
    %c0_i32 = arith.constant 0 : i32
    %c0_i32_0 = arith.constant 0 : i32
    %c0_i32_1 = arith.constant 0 : i32
    return %c0_i32, %c0_i32_0 : i32, i32
  }
  func.func @transform_6(%arg0: i32) -> (i32, i32) {
    %c0_i32 = arith.constant 0 : i32
    %c0_i32_0 = arith.constant 0 : i32
    return %arg0, %c0_i32 : i32, i32
  }
  func.func @transform_7(%arg0: i32) -> (i32, i32) {
    %c0_i32 = arith.constant 0 : i32
    %c0_i32_0 = arith.constant 0 : i32
    %c0_i32_1 = arith.constant 0 : i32
    return %c0_i32, %c0_i32_0 : i32, i32
  }
}

</mosaic_0001>

<bundles_post_ra>
// kernel: tpu_custom_call.1
= control target key start
LH: loop header
LB: loop body
LE: loop exit
PB: predicated region body
PF: predicated region fallthrough
CT: control target
= control target key end

     0   :  { %13 = vsyncpa [#allocation5], 0  ;;  %s4168_s0 = inlined_call_operand.hbm [shape: bf16[64,128], index: 0, kind: input, shape index: {}]   ;;  %s4169_s1 = inlined_call_operand.hbm [shape: f32[8,128], index: 1, kind: input, shape index: {}]   ;;  %s4170_s2 = inlined_call_operand.hbm [shape: bf16[128,384], index: 2, kind: input, shape index: {}]   ;;  %s4171_s3 = inlined_call_operand.hbm [shape: bf16[128,384], index: 3, kind: input, shape index: {}]   ;;  %s4172_s4 = inlined_call_operand.vmem [shape: f32[1,384], index: 4, kind: input, shape index: {}]   ;;  %s4173_s5 = inlined_call_operand.vmem [shape: f32[1,128], index: 5, kind: input, shape index: {}]   ;;  %s4174_s6 = inlined_call_operand.hbm [shape: bf16[64,128], index: 6, kind: output, shape index: {0}]   ;;  %s4175_s7 = inlined_call_operand.hbm [shape: f32[8,128], index: 7, kind: output, shape index: {1}]  }
   0x1   :  { %14 = vsyncpa [#allocation8], 0 }
   0x2   :  { %15 = vsyncpa [#allocation11], 0 }
   0x3   :  { %16 = vsyncpa [#allocation6], 0  ;;  %s36_s26 = sshll.u32 %s4169_s1, 4  ;;  %s37_s26 = int_to_ptr.hbm [resolvable:$true] %s36_s26 }
   0x4   :  { %17 = vsyncpa [#allocation14], 0  ;;  %s3901_s27 = smov [#allocation7]   ;;  %s22_s8 = sshll.u32 %s4168_s0, 4  ;;  %s23_s8 = int_to_ptr.hbm [resolvable:$true] %s22_s8 }
   0x5   :  { %s38_s28 = sshll.u32 %s3901_s27, 4  ;;  %s3902_s9 = smov [#allocation4]   ;;  %s39_s28 = int_to_ptr.vmem [resolvable:$true] %s38_s28 }
   0x6   :  { %41 = dma.hbm_to_vmem [thread:$0]  %s37_s26, 128, %s39_s28, [#allocation8]  }
   0x7   :  { %s24_s10 = sshll.u32 %s3902_s9, 4  ;;  %s3903_s11 = smov 64   ;;  %s25_s10 = int_to_ptr.vmem [resolvable:$true] %s24_s10 }
   0x8   :  { %s3904_s12 = smov 4   ;;  %s46_s14 = sshll.u32 %s4170_s2, 4  ;;  %s47_s14 = int_to_ptr.hbm [resolvable:$true] %s46_s14 }
   0x9   :  { %30 = dma.hbm_to_vmem [thread:$0]  %s23_s8, 512, %s25_s10, [#allocation5], %s3903_s11, %s3903_s11, %s3904_s12  }
   0xa   :  { %s3905_s15 = smov [#allocation9]   ;;  %s59_s18 = sshll.u32 %s4171_s3, 4  ;;  %s60_s18 = int_to_ptr.hbm [resolvable:$true] %s59_s18 }
   0xb   :  { %s48_s16 = sshll.u32 %s3905_s15, 4  ;;  %s3906_s19 = smov 192   ;;  %s49_s16 = int_to_ptr.vmem [resolvable:$true] %s48_s16 }
   0xc   :  { %s3907_s20 = smov 12   ;;  %s3908_s21 = smov [#allocation10]  }
   0xd   :  { %54 = dma.hbm_to_vmem [thread:$0]  %s47_s14, 3072, %s49_s16, [#allocation8], %s3906_s19, %s3906_s19, %s3907_s20  }
   0xe   :  { %s61_s22 = sshll.u32 %s3908_s21, 4  ;;  %s62_s22 = int_to_ptr.vmem [resolvable:$true] %s61_s22 }
   0xf   :  { %67 = dma.hbm_to_vmem [thread:$0]  %s60_s18, 3072, %s62_s22, [#allocation11], %s3906_s19, %s3906_s19, %s3907_s20  }
  0x10   :  { %3891 = dma.done.wait [#allocation5], 512  }
  0x11   :  { %3892 = vsyncadd [#allocation5], 4294966784 }
  0x12   :  { %3893 = dma.done.wait [#allocation8], 3200  }
  0x13   :  { %3894 = vsyncadd [#allocation8], 4294964096 }
  0x14   :  { %3895 = dma.done.wait [#allocation11], 3072  }
  0x15   :  { %3896 = vsyncadd [#allocation11], 4294964224  ;;  %v2635_v0 = vld [vmem:[#allocation9 + $0xa8] sm:$0xf]  ;;  %v3455_v1 = vld [vmem:[#allocation9 + $0xb0] sm:$0xf0] }
  0x16   :  { %v2731_v2 = vld [vmem:[#allocation10 + $0xa8] sm:$0xf]  ;;  %v2636_v3 = vor.u32 %v3455_v1, %v2635_v0  ;;  %v3479_v4 = vld [vmem:[#allocation10 + $0xb0] sm:$0xf0]  ;;  %v2623_v5 = vld [vmem:[#allocation9 + $0x90] sm:$0xf] }
  0x17   :  { %v3452_v6 = vld [vmem:[#allocation9 + $0x98] sm:$0xf0]  ;;  %v2732_v7 = vor.u32 %v3479_v4, %v2731_v2  ;;  %v2719_v8 = vld [vmem:[#allocation10 + $0x90] sm:$0xf]  ;;  %v2611_v12 = vld [vmem:[#allocation9 + $0x78] sm:$0xf] }
  0x18   :  { %v3476_v9 = vld [vmem:[#allocation10 + $0x98] sm:$0xf0]  ;;  %294 = vmatpush.bf16.msra.mxu0 %v2636_v3  ;;  %v2624_v10 = vor.u32 %v3452_v6, %v2623_v5  ;;  %v3449_v13 = vld [vmem:[#allocation9 + $0x80] sm:$0xf0]  ;;  %v2707_v14 = vld [vmem:[#allocation10 + $0x78] sm:$0xf] }
  0x19   :  { %573 = vmatpush.bf16.msra.mxu3 %v2732_v7  ;;  %v2720_v11 = vor.u32 %v3476_v9, %v2719_v8  ;;  %v3473_v15 = vld [vmem:[#allocation10 + $0x80] sm:$0xf0]  ;;  %v2612_v16 = vor.u32 %v3449_v13, %v2611_v12  ;;  %v2599_v18 = vld [vmem:[#allocation9 + $0x60] sm:$0xf]  ;;  %v3446_v19 = vld [vmem:[#allocation9 + $0x68] sm:$0xf0] }
  0x1a   :  { %v2708_v17 = vor.u32 %v3473_v15, %v2707_v14  ;;  %v2695_v20 = vld [vmem:[#allocation10 + $0x60] sm:$0xf]  ;;  %v3470_v21 = vld [vmem:[#allocation10 + $0x68] sm:$0xf0]  ;;  %v2600_v22 = vor.u32 %v3446_v19, %v2599_v18  ;;  %v2587_v24 = vld [vmem:[#allocation9 + $0x48] sm:$0xf] }
  0x1b   :  { %v2696_v23 = vor.u32 %v3470_v21, %v2695_v20  ;;  %v3443_v25 = vld [vmem:[#allocation9 + $0x50] sm:$0xf0]  ;;  %v3454_v26 = vld [vmem:[#allocation9 + $0xac] sm:$0xf]  ;;  %v2683_v27 = vld [vmem:[#allocation10 + $0x48] sm:$0xf] }
  0x1c   :  { %295 = vmatpush.bf16.msra.mxu0 %v2624_v10  ;;  %v3467_v28 = vld [vmem:[#allocation10 + $0x50] sm:$0xf0]  ;;  %v2637_v29 = vld [vmem:[#allocation9 + $0xb4] sm:$0xf0]  ;;  %v2625_v32 = vld [vmem:[#allocation9 + $0x9c] sm:$0xf0]  ;;  %v2588_v33 = vor.u32 %v3443_v25, %v2587_v24 }
  0x1d   :  { %574 = vmatpush.bf16.msra.mxu3 %v2720_v11  ;;  %v2640_v30 = vor.u32 %v3454_v26, %v2637_v29  ;;  %v3451_v31 = vld [vmem:[#allocation9 + $0x94] sm:$0xf]  ;;  %v2684_v34 = vor.u32 %v3467_v28, %v2683_v27  ;;  %v2575_v35 = vld [vmem:[#allocation9 + $0x30] sm:$0xf]  ;;  %v3440_v36 = vld [vmem:[#allocation9 + $0x38] sm:$0xf0] }
  0x1e   :  { %v2671_v37 = vld [vmem:[#allocation10 + $0x30] sm:$0xf]  ;;  %v2628_v38 = vor.u32 %v3451_v31, %v2625_v32  ;;  %v3464_v39 = vld [vmem:[#allocation10 + $0x38] sm:$0xf0]  ;;  %v2613_v41 = vld [vmem:[#allocation9 + $0x84] sm:$0xf0]  ;;  %v2576_v42 = vor.u32 %v3440_v36, %v2575_v35 }
  0x1f   :  { %323 = vmatpush.bf16.msra.mxu1 %v2640_v30  ;;  %v3448_v40 = vld [vmem:[#allocation9 + $0x7c] sm:$0xf]  ;;  %v2563_v43 = vld [vmem:[#allocation9 + $0x18] sm:$0xf]  ;;  %v3437_v44 = vld [vmem:[#allocation9 + $0x20] sm:$0xf0]  ;;  %v2672_v45 = vor.u32 %v3464_v39, %v2671_v37 }
  0x20   :  { %296 = vmatpush.bf16.msra.mxu0 %v2612_v16  ;;  %v2659_v46 = vld [vmem:[#allocation10 + $0x18] sm:$0xf]  ;;  %v3461_v47 = vld [vmem:[#allocation10 + $0x20] sm:$0xf0]  ;;  %v2616_v48 = vor.u32 %v3448_v40, %v2613_v41  ;;  %v2601_v50 = vld [vmem:[#allocation9 + $0x6c] sm:$0xf0]  ;;  %v2564_v56 = vor.u32 %v3437_v44, %v2563_v43 }
  0x21   :  { %575 = vmatpush.bf16.msra.mxu3 %v2708_v17  ;;  %v3445_v49 = vld [vmem:[#allocation9 + $0x64] sm:$0xf]  ;;  %v2643_v51 = vld [vmem:[#allocation9 + $0xb0] sm:$0xf]  ;;  %v3456_v52 = vld [vmem:[#allocation9 + $0xb8] sm:$0xf0]  ;;  %v2660_v59 = vor.u32 %v3461_v47, %v2659_v46 }
  0x22   :  { %v2551_v53 = vld [vmem:[#allocation9] sm:$0xf]  ;;  %v3434_v54 = vld [vmem:[#allocation9 + $0x8] sm:$0xf0]  ;;  %v2644_v55 = vor.u32 %v3456_v52, %v2643_v51  ;;  %v2733_v61 = vld [vmem:[#allocation10 + $0xb4] sm:$0xf0]  ;;  %v2604_v62 = vor.u32 %v3445_v49, %v2601_v50 }
  0x23   :  { %324 = vmatpush.bf16.msra.mxu1 %v2628_v38  ;;  %v2647_v57 = vld [vmem:[#allocation10] sm:$0xf]  ;;  %v3458_v58 = vld [vmem:[#allocation10 + $0x8] sm:$0xf0]  ;;  %v2739_v63 = vld [vmem:[#allocation10 + $0xb0] sm:$0xf]  ;;  %v2552_v5 = vor.u32 %v3434_v54, %v2551_v53 }
  0x24   :  { %297 = vmatpush.bf16.msra.mxu0 %v2600_v22  ;;  %v3478_v60 = vld [vmem:[#allocation10 + $0xac] sm:$0xf]  ;;  %v3480_v0 = vld [vmem:[#allocation10 + $0xb8] sm:$0xf0]  ;;  %352 = vmatpush.bf16.msra.mxu2 %v2644_v55  ;;  %v2631_v1 = vld [vmem:[#allocation9 + $0x98] sm:$0xf]  ;;  %v2648_v8 = vor.u32 %v3458_v58, %v2647_v57 }
  0x25   :  { %576 = vmatpush.bf16.msra.mxu3 %v2696_v23  ;;  %v3442_v2 = vld [vmem:[#allocation9 + $0x4c] sm:$0xf]  ;;  %v2589_v3 = vld [vmem:[#allocation9 + $0x54] sm:$0xf0]  ;;  %v3453_v4 = vld [vmem:[#allocation9 + $0xa0] sm:$0xf0]  ;;  %v2740_v10 = vor.u32 %v3480_v0, %v2739_v63  ;;  %v2736_v13 = vor.u32 %v3478_v60, %v2733_v61 }
  0x26   :  { %v3966_v6 = vld [vmem:[#allocation7] sm:$0xff]  ;;  %v2632_v7 = vor.u32 %v3453_v4, %v2631_v1  ;;  %v3475_v11 = vld [vmem:[#allocation10 + $0x94] sm:$0xf]  ;;  %v3477_v14 = vld [vmem:[#allocation10 + $0xa0] sm:$0xf0]  ;;  %v2592_v15 = vor.u32 %v3442_v2, %v2589_v3  ;;  %s2509_s18 = sshll.u32 %s4175_s7, 4  ;;  %s2510_s18 = int_to_ptr.hbm [resolvable:$true] %s2509_s18 }
  0x27   :  { %325 = vmatpush.bf16.msra.mxu1 %v2616_v48  ;;  %v3968_v9 = vld [vmem:[#allocation4] sm:$0xff]  ;;  %v2619_v16 = vld [vmem:[#allocation9 + $0x80] sm:$0xf]  ;;  %v3450_v17 = vld [vmem:[#allocation9 + $0x88] sm:$0xf0]  ;;  %v3972_v22 = vpack.c.bf16 %v3966_v6, %v3966_v6  ;;  %s3910_s19 = smov [#allocation12]  }
  0x28   :  { %298 = vmatpush.bf16.msra.mxu0 %v2588_v33  ;;  %v2727_v12 = vld [vmem:[#allocation10 + $0x98] sm:$0xf]  ;;  %353 = vmatpush.bf16.msra.mxu2 %v2632_v7  ;;  %v2721_v18 = vld [vmem:[#allocation10 + $0x9c] sm:$0xf0]  ;;  %v3439_v19 = vld [vmem:[#allocation9 + $0x34] sm:$0xf]  ;;  %v2620_v21 = vor.u32 %v3450_v17, %v2619_v16 }
  0x29   :  { %577 = vmatpush.bf16.msra.mxu3 %v2684_v34  ;;  %v2577_v20 = vld [vmem:[#allocation9 + $0x3c] sm:$0xf0]  ;;  %v3472_v23 = vld [vmem:[#allocation10 + $0x7c] sm:$0xf]  ;;  %v2728_v24 = vor.u32 %v3477_v14, %v2727_v12  ;;  %v2724_v26 = vor.u32 %v3475_v11, %v2721_v18  ;;  %v3474_v27 = vld [vmem:[#allocation10 + $0x88] sm:$0xf0] }
  0x2a   :  { %v2715_v25 = vld [vmem:[#allocation10 + $0x80] sm:$0xf]  ;;  %v2580_v28 = vor.u32 %v3439_v19, %v2577_v20  ;;  %v2607_v29 = vld [vmem:[#allocation9 + $0x68] sm:$0xf]  ;;  %v3447_v30 = vld [vmem:[#allocation9 + $0x70] sm:$0xf0] }
  0x2b   :  { %326 = vmatpush.bf16.msra.mxu1 %v2604_v62  ;;  %v2709_v31 = vld [vmem:[#allocation10 + $0x84] sm:$0xf0]  ;;  %v3436_v32 = vld [vmem:[#allocation9 + $0x1c] sm:$0xf]  ;;  %v2608_v34 = vor.u32 %v3447_v30, %v2607_v29  ;;  %v2595_v35 = vld [vmem:[#allocation9 + $0x50] sm:$0xf]  ;;  %v2716_v37 = vor.u32 %v3474_v27, %v2715_v25 }
  0x2c   :  { %299 = vmatpush.bf16.msra.mxu0 %v2576_v42  ;;  %v2565_v33 = vld [vmem:[#allocation9 + $0x24] sm:$0xf0]  ;;  %354 = vmatpush.bf16.msra.mxu2 %v2620_v21  ;;  %v3444_v36 = vld [vmem:[#allocation9 + $0x58] sm:$0xf0]  ;;  %v2712_v38 = vor.u32 %v3472_v23, %v2709_v31  ;;  %v3469_v39 = vld [vmem:[#allocation10 + $0x64] sm:$0xf] }
  0x2d   :  { %578 = vmatpush.bf16.msra.mxu3 %v2672_v45  ;;  %v2703_v40 = vld [vmem:[#allocation10 + $0x68] sm:$0xf]  ;;  %v3471_v41 = vld [vmem:[#allocation10 + $0x70] sm:$0xf0]  ;;  %v2568_v42 = vor.u32 %v3436_v32, %v2565_v33  ;;  %v2697_v43 = vld [vmem:[#allocation10 + $0x6c] sm:$0xf0]  ;;  %v2596_v46 = vor.u32 %v3444_v36, %v2595_v35 }
  0x2e   :  { %v3433_v44 = vld [vmem:[#allocation9 + $0x4] sm:$0xf]  ;;  %v2553_v45 = vld [vmem:[#allocation9 + $0xc] sm:$0xf0]  ;;  %v2583_v47 = vld [vmem:[#allocation9 + $0x38] sm:$0xf]  ;;  %v2704_v49 = vor.u32 %v3471_v41, %v2703_v40  ;;  %v2700_v50 = vor.u32 %v3469_v39, %v2697_v43 }
  0x2f   :  { %327 = vmatpush.bf16.msra.mxu1 %v2592_v15  ;;  %v3441_v48 = vld [vmem:[#allocation9 + $0x40] sm:$0xf0]  ;;  %v2556_v51 = vor.u32 %v3433_v44, %v2553_v45  ;;  %v2691_v52 = vld [vmem:[#allocation10 + $0x50] sm:$0xf]  ;;  %v3468_v53 = vld [vmem:[#allocation10 + $0x58] sm:$0xf0] }
  0x30   :  { %300 = vmatpush.bf16.msra.mxu0 %v2564_v56  ;;  %355 = vmatpush.bf16.msra.mxu2 %v2608_v34  ;;  %v3466_v54 = vld [vmem:[#allocation10 + $0x4c] sm:$0xf]  ;;  %v2685_v55 = vld [vmem:[#allocation10 + $0x54] sm:$0xf0]  ;;  %v2584_v56 = vor.u32 %v3441_v48, %v2583_v47  ;;  %v2571_v57 = vld [vmem:[#allocation9 + $0x20] sm:$0xf] }
  0x31   :  { %579 = vmatpush.bf16.msra.mxu3 %v2660_v59  ;;  %v3438_v58 = vld [vmem:[#allocation9 + $0x28] sm:$0xf0]  ;;  %v2692_v59 = vor.u32 %v3468_v53, %v2691_v52  ;;  %v2688_v60 = vor.u32 %v3466_v54, %v2685_v55  ;;  %v2679_v61 = vld [vmem:[#allocation10 + $0x38] sm:$0xf]  ;;  %v3465_v62 = vld [vmem:[#allocation10 + $0x40] sm:$0xf0] }
  0x32   :  { %v3430_v63 = vld [vmem:[#allocation4 + $0x8] sm:$0xff]  ;;  %v3463_v0 = vld [vmem:[#allocation10 + $0x34] sm:$0xf]  ;;  %v2572_v2 = vor.u32 %v3438_v58, %v2571_v57  ;;  %v2680_v3 = vor.u32 %v3465_v62, %v2679_v61  ;;  %v2559_v7 = vld [vmem:[#allocation9 + $0x8] sm:$0xf]  ;;  %s2493_s20 = sshll.u32 %s3910_s19, 4  ;;  %s2494_s20 = int_to_ptr.vmem [resolvable:$true] %s2493_s20 }
  0x33   :  { %328 = vmatpush.bf16.msra.mxu1 %v2580_v28  ;;  %v2673_v1 = vld [vmem:[#allocation10 + $0x3c] sm:$0xf0]  ;;  %v3462_v12 = vld [vmem:[#allocation10 + $0x28] sm:$0xf0]  ;;  %v2655_v16 = vld [vmem:[#allocation10 + $0x8] sm:$0xf] }
  0x34   :  { %301 = vmatpush.bf16.msra.mxu0 %v2552_v5  ;;  %356 = vmatpush.bf16.msra.mxu2 %v2596_v46  ;;  %v2676_v4 = vor.u32 %v3463_v0, %v2673_v1  ;;  %v3460_v5 = vld [vmem:[#allocation10 + $0x1c] sm:$0xf]  ;;  %v2667_v11 = vld [vmem:[#allocation10 + $0x20] sm:$0xf]  ;;  %v3459_v17 = vld [vmem:[#allocation10 + $0x10] sm:$0xf0] }
  0x35   :  { %580 = vmatpush.bf16.msra.mxu3 %v2648_v8  ;;  %v3435_v8 = vld [vmem:[#allocation9 + $0x10] sm:$0xf0]  ;;  %v2668_v14 = vor.u32 %v3462_v12, %v2667_v11  ;;  %v3457_v18 = vld [vmem:[#allocation10 + $0x4] sm:$0xf]  ;;  %v2649_v19 = vld [vmem:[#allocation10 + $0xc] sm:$0xf0]  ;;  %v2656_v20 = vor.u32 %v3459_v17, %v2655_v16 }
  0x36   :  { %v2652_v21 = vor.u32 %v3457_v18, %v2649_v19  ;;  %v3431_v23 = vld [vmem:[#allocation4 + $0x10] sm:$0xff]  ;;  %v2831_v28 = vld [vmem:[#allocation10 + $0xb4] sm:$0xf0]  ;;  %v2817_v30 = vld [vmem:[#allocation10 + $0x90] sm:$0xf]  ;;  %s2495_s2 = sshll.u32 %s4174_s6, 4  ;;  %s2496_s2 = int_to_ptr.hbm [resolvable:$true] %s2495_s2 }
  0x37   :  { %302 = vmatmul.bf16.vlgmr.msra.gmra.mxu0 %v3968_v9  ;;  %329 = vmatpush.bf16.msra.mxu1 %v2568_v42  ;;  %v2829_v25 = vld [vmem:[#allocation10 + $0xa8] sm:$0xf]  ;;  %v3502_v27 = vld [vmem:[#allocation10 + $0xac] sm:$0xf]  ;;  %v3500_v31 = vld [vmem:[#allocation10 + $0x98] sm:$0xf0] }
  0x38   :  { %599 = vmatpush.bf16.msrb.mxu0 %v2740_v10  ;;  %581 = vmatmul.bf16.vlgmr.msra.gmra.mxu3 %v3972_v22  ;;  %v2661_v10 = vld [vmem:[#allocation10 + $0x24] sm:$0xf0]  ;;  %v2834_v29 = vor.u32 %v3502_v27, %v2831_v28  ;;  %v3499_v32 = vld [vmem:[#allocation10 + $0x94] sm:$0xf]  ;;  %v2818_v33 = vor.u32 %v3500_v31, %v2817_v30  ;;  %v2819_v34 = vld [vmem:[#allocation10 + $0x9c] sm:$0xf0] }
  0x39   :  { %586 = vmatpush.bf16.msrb.mxu3 %v2736_v13  ;;  %357 = vmatpush.bf16.msra.mxu2 %v2584_v56  ;;  %v2560_v13 = vor.u32 %v3435_v8, %v2559_v7  ;;  %v2664_v15 = vor.u32 %v3460_v5, %v2661_v10  ;;  %v2822_v35 = vor.u32 %v3499_v32, %v2819_v34  ;;  %v2837_v46 = vld [vmem:[#allocation10 + $0xb0] sm:$0xf]  ;;  %v3504_v47 = vld [vmem:[#allocation10 + $0xb8] sm:$0xf0]  ;;  %v2805_v56 = vld [vmem:[#allocation10 + $0x78] sm:$0xf] }
  0x3a   :  { %v2838_v48 = vor.u32 %v3504_v47, %v2837_v46  ;;  %v3497_v57 = vld [vmem:[#allocation10 + $0x80] sm:$0xf0]  ;;  %v3496_v58 = vld [vmem:[#allocation10 + $0x7c] sm:$0xf]  ;;  %v2813_v61 = vld [vmem:[#allocation10 + $0x80] sm:$0xf] }
  0x3b   :  { %330 = vmatpush.bf16.msra.mxu1 %v2556_v51  ;;  %v3501_v51 = vld [vmem:[#allocation10 + $0xa0] sm:$0xf0]  ;;  %v3498_v62 = vld [vmem:[#allocation10 + $0x88] sm:$0xf0]  ;;  %v2793_v0 = vld [vmem:[#allocation10 + $0x60] sm:$0xf] }
  0x3c   :  { %600 = vmatpush.bf16.msrb.mxu0 %v2728_v24  ;;  %v3432_v24 = vld [vmem:[#allocation4 + $0x18] sm:$0xff]  ;;  %v3494_v1 = vld [vmem:[#allocation10 + $0x68] sm:$0xf0]  ;;  %v2781_v12 = vld [vmem:[#allocation10 + $0x48] sm:$0xf] }
  0x3d   :  { %587 = vmatpush.bf16.msrb.mxu3 %v2724_v26  ;;  %358 = vmatpush.bf16.msra.mxu2 %v2572_v2  ;;  %v3503_v26 = vld [vmem:[#allocation10 + $0xb0] sm:$0xf0]  ;;  %v3493_v2 = vld [vmem:[#allocation10 + $0x64] sm:$0xf]  ;;  %v2794_v7 = vor.u32 %v3494_v1, %v2793_v0  ;;  %v2795_v8 = vld [vmem:[#allocation10 + $0x6c] sm:$0xf0] }
  0x3e   :  { %331 = vmatmul.bf16.vlgmr.msra.gmra.mxu1 %v3968_v9  ;;  %v2798_v11 = vor.u32 %v3493_v2, %v2795_v8  ;;  %v2783_v16 = vld [vmem:[#allocation10 + $0x54] sm:$0xf0]  ;;  %v2801_v19 = vld [vmem:[#allocation10 + $0x68] sm:$0xf]  ;;  %v3488_v27 = vld [vmem:[#allocation10 + $0x38] sm:$0xf0] }
  0x3f   :  { %v2771_v30 = vld [vmem:[#allocation10 + $0x3c] sm:$0xf0]  ;;  %v3492_v34 = vld [vmem:[#allocation10 + $0x58] sm:$0xf0]  ;;  %v2759_v46 = vld [vmem:[#allocation10 + $0x24] sm:$0xf0] }
  0x40   :  { %601 = vmatpush.bf16.msrb.mxu0 %v2716_v37  ;;  %v2777_v47 = vld [vmem:[#allocation10 + $0x38] sm:$0xf]  ;;  %v2753_v1 = vld [vmem:[#allocation10 + $0x8] sm:$0xf]  ;;  %v3483_v2 = vld [vmem:[#allocation10 + $0x10] sm:$0xf0] }
  0x41   :  { %588 = vmatpush.bf16.msrb.mxu3 %v2712_v38  ;;  %359 = vmatpush.bf16.msra.mxu2 %v2560_v13  ;;  %v3491_v13 = vld [vmem:[#allocation10 + $0x50] sm:$0xf0] }
  0x44   :  { %602 = vmatpush.bf16.msrb.mxu0 %v2704_v49  ;;  %360 = vmatmul.bf16.vlgmr.msra.gmra.mxu2 %v3968_v9  ;;  %v2830_v9 = vor.u32 %v3503_v26, %v2829_v25  ;;  %v2769_v26 = vld [vmem:[#allocation10 + $0x30] sm:$0xf] }
  0x45   :  { %589 = vmatpush.bf16.msrb.mxu3 %v2700_v50  ;;  %845 = vmatpush.bf16.msrb.mxu2 %v2834_v29  ;;  %v2825_v50 = vld [vmem:[#allocation10 + $0x98] sm:$0xf]  ;;  %v3487_v29 = vld [vmem:[#allocation10 + $0x34] sm:$0xf] }
  0x46   :  { %832 = vmatpush.bf16.msrb.mxu1 %v2830_v9  ;;  %v2826_v53 = vor.u32 %v3501_v51, %v2825_v50 }
  0x47   :  { %307 = vmatmul.bf16.gmra.mxu0 %v3430_v63 }
  0x48   :  { %603 = vmatpush.bf16.msrb.mxu0 %v2692_v59  ;;  %v2806_v59 = vor.u32 %v3497_v57, %v2805_v56  ;;  %v2745_v57 = vld [vmem:[#allocation10] sm:$0xf] }
  0x49   :  { %590 = vmatpush.bf16.msrb.mxu3 %v2688_v60  ;;  %846 = vmatpush.bf16.msrb.mxu2 %v2822_v35  ;;  %v2807_v60 = vld [vmem:[#allocation10 + $0x84] sm:$0xf0]  ;;  %v2770_v35 = vor.u32 %v3488_v27, %v2769_v26 }
  0x4a   :  { %833 = vmatpush.bf16.msrb.mxu1 %v2818_v33  ;;  %v2789_v33 = vld [vmem:[#allocation10 + $0x50] sm:$0xf] }
  0x4c   :  { %604 = vmatpush.bf16.msrb.mxu0 %v2680_v3 }
  0x4d   :  { %591 = vmatpush.bf16.msrb.mxu3 %v2676_v4  ;;  %v2814_v4 = vor.u32 %v3498_v62, %v2813_v61  ;;  %v3481_v61 = vld [vmem:[#allocation10 + $0x4] sm:$0xf]  ;;  %v2747_v62 = vld [vmem:[#allocation10 + $0xc] sm:$0xf0] }
  0x4e   :  { %336 = vmatmul.bf16.gmra.mxu1 %v3430_v63 }
  0x4f   :  { %834 = vmatpush.bf16.msrb.mxu1 %v2806_v59 }
  0x50   :  { %605 = vmatpush.bf16.msrb.mxu0 %v2668_v14 }
  0x51   :  { %592 = vmatpush.bf16.msrb.mxu3 %v2664_v15  ;;  %v3490_v15 = vld [vmem:[#allocation10 + $0x4c] sm:$0xf] }
  0x52   :  { %v2786_v25 = vor.u32 %v3490_v15, %v2783_v16 }
  0x53   :  { %835 = vmatpush.bf16.msrb.mxu1 %v2794_v7  ;;  %v2750_v7 = vor.u32 %v3481_v61, %v2747_v62 }
  0x54   :  { %606 = vmatpush.bf16.msrb.mxu0 %v2656_v20  ;;  %365 = vmatmul.bf16.gmra.mxu2 %v3430_v63  ;;  %v2810_v63 = vor.u32 %v3496_v58, %v2807_v60  ;;  %v3482_v58 = vld [vmem:[#allocation10 + $0x8] sm:$0xf0] }
  0x55   :  { %593 = vmatpush.bf16.msrb.mxu3 %v2652_v21  ;;  %v2782_v21 = vor.u32 %v3491_v13, %v2781_v12  ;;  %v2746_v0 = vor.u32 %v3482_v58, %v2745_v57  ;;  %v2754_v12 = vor.u32 %v3483_v2, %v2753_v1 }
  0x56   :  { %847 = vmatpush.bf16.msrb.mxu2 %v2810_v63 }
  0x57   :  { %312 = vmatmul.bf16.gmra.mxu0 %v3431_v23  ;;  %836 = vmatpush.bf16.msrb.mxu1 %v2782_v21 }
  0x58   :  { %594 = vmatmul.bf16.vlgmr.msrb.gmra.mxu3 %v3972_v22 }
  0x59   :  { %858 = vmatpush.bf16.msra.mxu3 %v2838_v48 }
  0x5a   :  { %848 = vmatpush.bf16.msrb.mxu2 %v2798_v11 }
  0x5b   :  { %837 = vmatpush.bf16.msrb.mxu1 %v2770_v35 }
  0x5d   :  { %859 = vmatpush.bf16.msra.mxu3 %v2826_v53  ;;  %v3486_v53 = vld [vmem:[#allocation10 + $0x28] sm:$0xf0] }
  0x5e   :  { %341 = vmatmul.bf16.gmra.mxu1 %v3431_v23  ;;  %849 = vmatpush.bf16.msrb.mxu2 %v2786_v25 }
  0x61   :  { %860 = vmatpush.bf16.msra.mxu3 %v2814_v4 }
  0x64   :  { %370 = vmatmul.bf16.gmra.mxu2 %v3431_v23 }
  0x67   :  { %317 = vmatmul.bf16.gmra.mxu0 %v3432_v24 }
  0x6e   :  { %346 = vmatmul.bf16.gmra.mxu1 %v3432_v24 }
  0x74   :  { %375 = vmatmul.bf16.gmra.mxu2 %v3432_v24  ;;  %v3495_v24 = vld [vmem:[#allocation10 + $0x70] sm:$0xf0] }
  0x75   :  { %v2802_v9 = vor.u32 %v3495_v24, %v2801_v19 }
  0x77   :  { %607 = vmatmul.bf16.vlgmr.msrb.gmra.mxu0 %v3972_v22  ;;  %v134_v22 = vld [vmem:[%s4172_s4] sm:$0x7]  ;;  %861 = vmatpush.bf16.msra.mxu3 %v2802_v9 }
  0x78   :  { %v3983_v37 = vperm.slane %v134_v22, 0  ;;  %v3995_v55 = vperm.slane %v134_v22, 1  ;;  %v4005_v23 = vperm.slane %v134_v22, 2  ;;  %v2790_v22 = vor.u32 %v3492_v34, %v2789_v33 }
  0x7b   :  { %862 = vmatpush.bf16.msra.mxu3 %v2790_v22 }
  0xb4   :  { %v303_v36 = vpop.f32.mrf.mxu0 }
  0xb5   :  { %v304_v41 = vadd.f32 %v303_v36, %v3983_v37 }
  0xbb   :  { %v582_v38 = vpop.f32.mrf.mxu3  ;;  %v332_v5 = vpop.f32.mrf.mxu1 }
  0xbc   :  { %v305_v39 = vpop.f32.mrf.mxu0  ;;  %v612_v44 = vadd.f32 %v582_v38, %v304_v41  ;;  %v333_v18 = vadd.f32 %v332_v5, %v3995_v55  ;;  %v2757_v41 = vld [vmem:[#allocation10 + $0x18] sm:$0xf] }
  0xbd   :  { %v3986_v40 = vadd.f32 %v305_v39, %v3983_v37  ;;  %v2774_v39 = vor.u32 %v3487_v29, %v2771_v30 }
  0xbe   :  { %v2741_v49 = vmul.f32 -1.442695, %v612_v44  ;;  %v3484_v44 = vld [vmem:[#allocation10 + $0x1c] sm:$0xf] }
  0xbf   :  { %850 = vmatpush.bf16.msrb.mxu2 %v2774_v39  ;;  %v2762_v56 = vor.u32 %v3484_v44, %v2759_v46 }
  0xc0   :  { %3667 = vpow2.f32 %v2741_v49  ;;  %v3489_v49 = vld [vmem:[#allocation10 + $0x40] sm:$0xf0] }
  0xc1   :  { %v2778_v51 = vor.u32 %v3489_v49, %v2777_v47 }
  0xc3   :  { %v584_v42 = vpop.f32.mrf.mxu3  ;;  %863 = vmatpush.bf16.msra.mxu3 %v2778_v51  ;;  %851 = vmatpush.bf16.msrb.mxu2 %v2762_v56  ;;  %v4049_v62 = vpop.f32.mrf.mxu1 }
  0xc4   :  { %v308_v43 = vpop.f32.mrf.mxu0  ;;  %v3485_v42 = vld [vmem:[#allocation10 + $0x20] sm:$0xf0] }
  0xc5   :  { %v3990_v45 = vadd.f32 %v308_v43, %v3983_v37  ;;  %v2758_v50 = vor.u32 %v3485_v42, %v2757_v41 }
  0xc6   :  { %v3668_v10 = vpop.eup %3667 }
  0xc7   :  { %v3997_v3 = vpop.f32.mrf.mxu2  ;;  %v4003_v20 = vadd.f32 1.0, %v3668_v10  ;;  %838 = vmatpush.bf16.msrb.mxu1 %v2758_v50  ;;  %852 = vmatpush.bf16.msrb.mxu2 %v2750_v7  ;;  %v3526_v7 = vld [vmem:[#allocation10 + $0xac] sm:$0xf] }
  0xc8   :  { %v362_v34 = vadd.f32 %v3997_v3, %v4005_v23 }
  0xc9   :  { %3669 = vrcp.f32 %v4003_v20  ;;  %v628_v27 = vand.u32 2147483648, %v4003_v20  ;;  %vm622_vm1 = vweird.f32 %v4003_v20  ;;  %v626_v9 = vand.u32 2147483647, %v4003_v20 }
  0xcb   :  { %839 = vmatpush.bf16.msrb.mxu1 %v2746_v0  ;;  %v629_v33 = vor.u32 1.1754944e-38, %v628_v27  ;;  %vm627_vm3 = vcmp.eq.f32.partialorder %v626_v9, 8.507059e+37  ;;  %v2923_v27 = vld [vmem:[#allocation10 + $0x98] sm:$0xf]  ;;  %v3525_v9 = vld [vmem:[#allocation10 + $0xa0] sm:$0xf0] }
  0xcc   :  { %v310_v52 = vpop.f32.mrf.mxu0 }
  0xcd   :  { %v3993_v54 = vadd.f32 %v310_v52, %v3983_v37  ;;  %v2765_v52 = vld [vmem:[#allocation10 + $0x20] sm:$0xf] }
  0xce   :  { %v2766_v63 = vor.u32 %v3486_v53, %v2765_v52 }
  0xcf   :  { %v363_v32 = vpop.f32.mrf.mxu2  ;;  %v3670_v59 = vpop.eup %3669 }
  0xd0   :  { %v4009_v36 = vadd.f32 %v363_v32, %v4005_v23  ;;  %v618_v5 = vmul.f32 %v3670_v59, %v4003_v20  ;;  %864 = vmatpush.bf16.msra.mxu3 %v2766_v63  ;;  %vm623_vm0 = vweird.f32 %v3670_v59  ;;  %v4051_v63 = vpop.f32.mrf.mxu1 }
  0xd1   :  { %vm624_vm2 = vmor %vm622_vm1, %vm623_vm0 }
  0xd2   :  { %v619_v13 = vsub.f32 1.0, %v618_v5  ;;  %v3527_v5 = vld [vmem:[#allocation10 + $0xb0] sm:$0xf0] }
  0xd4   :  { %v313_v14 = vpop.f32.mrf.mxu0  ;;  %865 = vmatpush.bf16.msra.mxu3 %v2754_v12  ;;  %v620_v16 = vmul.f32 %v3670_v59, %v619_v13  ;;  %v2935_v12 = vld [vmem:[#allocation10 + $0xb0] sm:$0xf]  ;;  %v3528_v13 = vld [vmem:[#allocation10 + $0xb8] sm:$0xf0] }
  0xd5   :  { %v4000_v17 = vadd.f32 %v313_v14, %v3983_v37 }
  0xd6   :  { %v621_v26 = vadd.f32 %v3670_v59, %v620_v16  ;;  %v2936_v16 = vor.u32 %v3528_v13, %v2935_v12 }
  0xd7   :  { %v366_v14 = vpop.f32.mrf.mxu2 }
  0xd8   :  { %v4019_v15 = vadd.f32 %v366_v14, %v4005_v23  ;;  %1118 = vmatpush.bf16.msra.mxu2 %v2936_v16  ;;  %v2867_v16 = vld [vmem:[#allocation10 + $0x30] sm:$0xf] }
  0xdb   :  { %v595_v28 = vpop.f32.mrf.mxu3 }
  0xdc   :  { %v632_v31 = vadd.f32 %v595_v28, %v333_v18  ;;  %v315_v43 = vpop.f32.mrf.mxu0  ;;  %v3659_v28 = vld [vmem:[%s4173_s5] ss:$0 sm:$0xff] }
  0xdd   :  { %v4012_v48 = vadd.f32 %v315_v43, %v3983_v37 }
  0xde   :  { %v2742_v38 = vmul.f32 -1.442695, %v632_v31 }
  0xdf   :  { %v368_v29 = vpop.f32.mrf.mxu2 }
  0xe0   :  { %3671 = vpow2.f32 %v2742_v38  ;;  %v4031_v31 = vadd.f32 %v368_v29, %v4005_v23  ;;  %v2924_v29 = vor.u32 %v3525_v9, %v2923_v27  ;;  %v3513_v9 = vld [vmem:[#allocation10 + $0x40] sm:$0xf0] }
  0xe2   :  { %1119 = vmatpush.bf16.msra.mxu2 %v2924_v29  ;;  %v3509_v29 = vld [vmem:[#allocation10 + $0x20] sm:$0xf0] }
  0xe3   :  { %v597_v60 = vpop.f32.mrf.mxu3 }
  0xe4   :  { %v318_v10 = vpop.f32.mrf.mxu0 }
  0xe5   :  { %v4016_v11 = vadd.f32 %v318_v10, %v3983_v37  ;;  %v2929_v10 = vld [vmem:[#allocation10 + $0xb4] sm:$0xf0] }
  0xe6   :  { %v3672_v4 = vpop.eup %3671  ;;  %v2932_v14 = vor.u32 %v3526_v7, %v2929_v10  ;;  %v2881_v7 = vld [vmem:[#allocation10 + $0x54] sm:$0xf0]  ;;  %v3516_v10 = vld [vmem:[#allocation10 + $0x58] sm:$0xf0] }
  0xe7   :  { %v636_v8 = vadd.f32 1.0, %v3672_v4  ;;  %v371_v43 = vpop.f32.mrf.mxu2  ;;  %v2927_v4 = vld [vmem:[#allocation10 + $0xa8] sm:$0xf] }
  0xe8   :  { %v4036_v46 = vadd.f32 %v371_v43, %v4005_v23  ;;  %1105 = vmatpush.bf16.msra.mxu1 %v2932_v14  ;;  %v3517_v43 = vld [vmem:[#allocation10 + $0x64] sm:$0xf] }
  0xe9   :  { %3673 = vrcp.f32 %v636_v8  ;;  %vm642_vm4 = vweird.f32 %v636_v8  ;;  %v648_v38 = vand.u32 2147483648, %v636_v8  ;;  %v646_v41 = vand.u32 2147483647, %v636_v8 }
  0xeb   :  { %v649_v47 = vor.u32 1.1754944e-38, %v648_v38  ;;  %vm647_vm7 = vcmp.eq.f32.partialorder %v646_v41, 8.507059e+37  ;;  %v2891_v41 = vld [vmem:[#allocation10 + $0x60] sm:$0xf] }
  0xec   :  { %v320_v19 = vpop.f32.mrf.mxu0 }
  0xed   :  { %v4022_v24 = vadd.f32 %v320_v19, %v3983_v37  ;;  %v625_v37 = vsel %vm624_vm2, %v3670_v59, %v621_v26  ;;  %v3524_v19 = vld [vmem:[#allocation10 + $0x98] sm:$0xf0]  ;;  %v2917_v26 = vld [vmem:[#allocation10 + $0x9c] sm:$0xf0] }
  0xee   :  { %v630_v20 = vsel %vm627_vm3, %v629_v33, %v625_v37  ;;  %v2903_v37 = vld [vmem:[#allocation10 + $0x78] sm:$0xf]  ;;  %v3520_v33 = vld [vmem:[#allocation10 + $0x7c] sm:$0xf] }
  0xef   :  { %v3674_v18 = vpop.eup %3673  ;;  %v373_v52 = vpop.f32.mrf.mxu2 }
  0xf0   :  { %v638_v21 = vmul.f32 %v3674_v18, %v636_v8  ;;  %vm643_vm5 = vweird.f32 %v3674_v18  ;;  %v4040_v57 = vadd.f32 %v373_v52, %v4005_v23  ;;  %v2928_v8 = vor.u32 %v3527_v5, %v2927_v4  ;;  %v3514_v4 = vld [vmem:[#allocation10 + $0x4c] sm:$0xf] }
  0xf1   :  { %vm644_vm6 = vmor %vm642_vm4, %vm643_vm5  ;;  %v2884_v13 = vor.u32 %v3514_v4, %v2881_v7 }
  0xf2   :  { %v639_v25 = vsub.f32 1.0, %v638_v21  ;;  %1092 = vmatpush.bf16.msra.mxu0 %v2928_v8  ;;  %v3523_v21 = vld [vmem:[#allocation10 + $0x94] sm:$0xf]  ;;  %v2887_v8 = vld [vmem:[#allocation10 + $0x50] sm:$0xf] }
  0xf3   :  { %v2888_v14 = vor.u32 %v3516_v10, %v2887_v8 }
  0xf4   :  { %v640_v30 = vmul.f32 %v3674_v18, %v639_v25  ;;  %v608_v32 = vpop.f32.mrf.mxu0 }
  0xf5   :  { %v656_v35 = vadd.f32 %v3659_v28, %v608_v32  ;;  %v2920_v28 = vor.u32 %v3523_v21, %v2917_v26  ;;  %v3521_v32 = vld [vmem:[#allocation10 + $0x80] sm:$0xf0]  ;;  %v3511_v21 = vld [vmem:[#allocation10 + $0x34] sm:$0xf]  ;;  %v2875_v26 = vld [vmem:[#allocation10 + $0x38] sm:$0xf] }
  0xf6   :  { %v641_v22 = vadd.f32 %v3674_v18, %v640_v30 }
  0xf7   :  { %v657_v39 = vmul.f32 %v656_v35, %v630_v20  ;;  %v376_v60 = vpop.f32.mrf.mxu2  ;;  %1106 = vmatpush.bf16.msra.mxu1 %v2920_v28  ;;  %v2905_v35 = vld [vmem:[#allocation10 + $0x84] sm:$0xf0]  ;;  %v2911_v20 = vld [vmem:[#allocation10 + $0x80] sm:$0xf]  ;;  %v2855_v28 = vld [vmem:[#allocation10 + $0x18] sm:$0xf] }
  0xf8   :  { %v645_v44 = vsel %vm644_vm6, %v3674_v18, %v641_v22  ;;  %v4047_v61 = vadd.f32 %v376_v60, %v4005_v23  ;;  %v2915_v18 = vld [vmem:[#allocation10 + $0x90] sm:$0xf]  ;;  %v3522_v22 = vld [vmem:[#allocation10 + $0x88] sm:$0xf0]  ;;  %v2908_v38 = vor.u32 %v3520_v33, %v2905_v35  ;;  %v3515_v60 = vld [vmem:[#allocation10 + $0x50] sm:$0xf0] }
  0xf9   :  { %v658_v42 = vadd.f32 %v657_v39, %v362_v34  ;;  %v650_v3 = vsel %vm647_vm7, %v649_v47, %v645_v44  ;;  %v2916_v25 = vor.u32 %v3524_v19, %v2915_v18  ;;  %v2904_v34 = vor.u32 %v3521_v32, %v2903_v37  ;;  %v3512_v18 = vld [vmem:[#allocation10 + $0x38] sm:$0xf0]  ;;  %v2863_v35 = vld [vmem:[#allocation10 + $0x20] sm:$0xf] }
  0xfa   :  { %v660_v50 = vsub.f32 1.0, %v650_v3  ;;  %v662_v56 = vmul.f32 %v650_v3, %v3966_v6  ;;  %v4053_v6 = vpop.f32.mrf.mxu1  ;;  %v2912_v39 = vor.u32 %v3522_v22, %v2911_v20  ;;  %v2899_v3 = vld [vmem:[#allocation10 + $0x68] sm:$0xf]  ;;  %v2868_v19 = vor.u32 %v3512_v18, %v2867_v16  ;;  %v3508_v33 = vld [vmem:[#allocation10 + $0x1c] sm:$0xf] }
  0xfb   :  { %3675 = vtanh.f32 %v658_v42  ;;  %1093 = vmatpush.bf16.msra.mxu0 %v2916_v25  ;;  %1107 = vmatpush.bf16.msra.mxu1 %v2908_v38  ;;  %v3518_v42 = vld [vmem:[#allocation10 + $0x68] sm:$0xf0]  ;;  %v2869_v25 = vld [vmem:[#allocation10 + $0x3c] sm:$0xf0]  ;;  %v2876_v32 = vor.u32 %v3513_v9, %v2875_v26 }
  0xfc   :  { %v610_v49 = vpop.f32.mrf.mxu0  ;;  %1120 = vmatpush.bf16.msra.mxu2 %v2912_v39  ;;  %v2892_v47 = vor.u32 %v3518_v42, %v2891_v41  ;;  %v2872_v27 = vor.u32 %v3511_v21, %v2869_v25  ;;  %v3510_v38 = vld [vmem:[#allocation10 + $0x28] sm:$0xf0]  ;;  %v2856_v41 = vor.u32 %v3509_v29, %v2855_v28  ;;  %v2843_v42 = vld [vmem:[#allocation10] sm:$0xf]  ;;  %v3660_v21 = vld [vmem:[%s4173_s5] ss:$0 sm:$0xff] }
  0xfd   :  { %v2893_v49 = vld [vmem:[#allocation10 + $0x6c] sm:$0xf0] }
  0xff   :  { %1094 = vmatpush.bf16.msra.mxu0 %v2904_v34  ;;  %v4063_v44 = vpop.f32.mrf.mxu2  ;;  %v2857_v34 = vld [vmem:[#allocation10 + $0x24] sm:$0xf0] }
 0x101   :  { %v3676_v51 = vpop.eup %3675 }
 0x102   :  { %v661_v53 = vmul.f32 %v3676_v51, %v660_v50  ;;  %v4055_v0 = vpop.f32.mrf.mxu1  ;;  %v3519_v50 = vld [vmem:[#allocation10 + $0x70] sm:$0xf0]  ;;  %v2896_v51 = vor.u32 %v3517_v43, %v2893_v49  ;;  %v2860_v43 = vor.u32 %v3508_v33, %v2857_v34  ;;  %v3506_v49 = vld [vmem:[#allocation10 + $0x8] sm:$0xf0] }
 0x103   :  { %v2900_v52 = vor.u32 %v3519_v50, %v2899_v3  ;;  %1095 = vmatpush.bf16.msra.mxu0 %v2892_v47  ;;  %v2864_v47 = vor.u32 %v3510_v38, %v2863_v35  ;;  %v3505_v3 = vld [vmem:[#allocation10 + $0x4] sm:$0xf]  ;;  %v2845_v50 = vld [vmem:[#allocation10 + $0xc] sm:$0xf0] }
 0x104   :  { %v4042_v58 = vadd.f32 %v662_v56, %v661_v53  ;;  %1108 = vmatpush.bf16.msra.mxu1 %v2896_v51  ;;  %v2851_v51 = vld [vmem:[#allocation10 + $0x8] sm:$0xf] }
 0x105   :  { %1121 = vmatpush.bf16.msra.mxu2 %v2900_v52  ;;  %v3507_v52 = vld [vmem:[#allocation10 + $0x10] sm:$0xf0] }
 0x106   :  { %v664_v59 = vpack.c.bf16 %v4042_v58, %v4042_v58  ;;  %v2852_v4 = vor.u32 %v3507_v52, %v2851_v51  ;;  %v3550_v51 = vld [vmem:[#allocation10 + $0xac] sm:$0xf] }
 0x108   :  { %665 = vst [vmem:[#allocation12] sm:$0xf] %v664_v59  ;;  %840 = vmatmul.bf16.vlgmr.msrb.gmra.mxu1 %v664_v59  ;;  %853 = vmatmul.bf16.vlgmr.msrb.gmra.mxu2 %v664_v59 }
 0x109   :  { %866 = vmatmul.bf16.vlgmr.msra.gmra.mxu3 %v664_v59  ;;  %v2879_v59 = vld [vmem:[#allocation10 + $0x48] sm:$0xf]  ;;  %1109 = vmatpush.bf16.msra.mxu1 %v2884_v13 }
 0x10a   :  { %v4057_v1 = vpop.f32.mrf.mxu1  ;;  %v2880_v5 = vor.u32 %v3515_v60, %v2879_v59  ;;  %1122 = vmatpush.bf16.msra.mxu2 %v2888_v14  ;;  %v2844_v59 = vor.u32 %v3506_v49, %v2843_v42  ;;  %v2848_v60 = vor.u32 %v3505_v3, %v2845_v50  ;;  %v3551_v50 = vld [vmem:[#allocation10 + $0xb0] sm:$0xf0] }
 0x10c   :  { %1096 = vmatpush.bf16.msra.mxu0 %v2880_v5 }
 0x10d   :  { %1110 = vmatpush.bf16.msra.mxu1 %v2872_v27 }
 0x10e   :  { %1123 = vmatpush.bf16.msra.mxu2 %v2876_v32 }
 0x110   :  { %1097 = vmatpush.bf16.msra.mxu0 %v2868_v19 }
 0x111   :  { %1111 = vmatpush.bf16.msra.mxu1 %v2860_v43 }
 0x112   :  { %v4059_v2 = vpop.f32.mrf.mxu1  ;;  %1124 = vmatpush.bf16.msra.mxu2 %v2864_v47 }
 0x114   :  { %1098 = vmatpush.bf16.msra.mxu0 %v2856_v41 }
 0x115   :  { %1112 = vmatpush.bf16.msra.mxu1 %v2848_v60 }
 0x116   :  { %1125 = vmatpush.bf16.msra.mxu2 %v2852_v4 }
 0x118   :  { %1099 = vmatpush.bf16.msra.mxu0 %v2844_v59  ;;  %v3552_v59 = vld [vmem:[#allocation10 + $0xb8] sm:$0xf0] }
 0x11a   :  { %v4061_v30 = vpop.f32.mrf.mxu1 }
 0x185   :  { %v841_v53 = vpop.f32.mrf.mxu1 }
 0x186   :  { %v871_v56 = vadd.f32 %v841_v53, %v3986_v40  ;;  %v335_v40 = vadd.f32 %v4049_v62, %v3995_v55 }
 0x188   :  { %v2839_v12 = vmul.f32 -1.442695, %v871_v56 }
 0x18a   :  { %3677 = vpow2.f32 %v2839_v12 }
 0x18b   :  { %v854_v37 = vpop.f32.mrf.mxu2 }
 0x18c   :  { %v891_v20 = vadd.f32 %v854_v37, %v335_v40  ;;  %v867_v22 = vpop.f32.mrf.mxu3 }
 0x18d   :  { %v843_v39 = vpop.f32.mrf.mxu1  ;;  %v915_v29 = vadd.f32 %v3660_v21, %v867_v22  ;;  %v3544_v21 = vld [vmem:[#allocation10 + $0x7c] sm:$0xf] }
 0x18e   :  { %v2840_v62 = vmul.f32 -1.442695, %v891_v20 }
 0x190   :  { %v3678_v53 = vpop.eup %3677  ;;  %3679 = vpow2.f32 %v2840_v62 }
 0x191   :  { %v875_v56 = vadd.f32 1.0, %v3678_v53  ;;  %v3027_v53 = vld [vmem:[#allocation10 + $0xb4] sm:$0xf0] }
 0x192   :  { %v3030_v60 = vor.u32 %v3550_v51, %v3027_v53  ;;  %v2979_v51 = vld [vmem:[#allocation10 + $0x54] sm:$0xf0]  ;;  %v3540_v53 = vld [vmem:[#allocation10 + $0x58] sm:$0xf0] }
 0x193   :  { %3681 = vrcp.f32 %v875_v56  ;;  %v856_v5 = vpop.f32.mrf.mxu2  ;;  %v887_v16 = vand.u32 2147483648, %v875_v56  ;;  %v885_v19 = vand.u32 2147483647, %v875_v56  ;;  %vm881_vm9 = vweird.f32 %v875_v56 }
 0x194   :  { %v869_v7 = vpop.f32.mrf.mxu3  ;;  %1365 = vmatpush.bf16.msrb.mxu0 %v3030_v60  ;;  %v3548_v5 = vld [vmem:[#allocation10 + $0x98] sm:$0xf0] }
 0x195   :  { %v888_v27 = vor.u32 1.1754944e-38, %v887_v16  ;;  %vm886_vm11 = vcmp.eq.f32.partialorder %v885_v19, 8.507059e+37  ;;  %v3547_v7 = vld [vmem:[#allocation10 + $0x94] sm:$0xf]  ;;  %v3545_v19 = vld [vmem:[#allocation10 + $0x80] sm:$0xf0] }
 0x196   :  { %v3680_v8 = vpop.eup %3679 }
 0x197   :  { %v895_v10 = vadd.f32 1.0, %v3680_v8 }
 0x199   :  { %v3682_v12 = vpop.eup %3681  ;;  %3683 = vrcp.f32 %v895_v10  ;;  %v907_v33 = vand.u32 2147483648, %v895_v10  ;;  %v905_v35 = vand.u32 2147483647, %v895_v10  ;;  %vm901_vm13 = vweird.f32 %v895_v10 }
 0x19a   :  { %v877_v13 = vmul.f32 %v3682_v12, %v875_v56  ;;  %vm882_vm8 = vweird.f32 %v3682_v12  ;;  %v3033_v56 = vld [vmem:[#allocation10 + $0xb0] sm:$0xf] }
 0x19b   :  { %vm883_vm10 = vmor %vm881_vm9, %vm882_vm8  ;;  %v908_v39 = vor.u32 1.1754944e-38, %v907_v33  ;;  %vm906_vm15 = vcmp.eq.f32.partialorder %v905_v35, 8.507059e+37  ;;  %v3034_v4 = vor.u32 %v3552_v59, %v3033_v56  ;;  %v2997_v35 = vld [vmem:[#allocation10 + $0x68] sm:$0xf] }
 0x19c   :  { %v878_v14 = vsub.f32 1.0, %v877_v13  ;;  %v3549_v13 = vld [vmem:[#allocation10 + $0xa0] sm:$0xf0] }
 0x19d   :  { %1378 = vmatpush.bf16.msrb.mxu1 %v3034_v4  ;;  %v2965_v4 = vld [vmem:[#allocation10 + $0x30] sm:$0xf] }
 0x19e   :  { %v879_v18 = vmul.f32 %v3682_v12, %v878_v14 }
 0x19f   :  { %v3684_v25 = vpop.eup %3683 }
 0x1a0   :  { %v897_v26 = vmul.f32 %v3684_v25, %v895_v10  ;;  %v880_v40 = vadd.f32 %v3682_v12, %v879_v18  ;;  %vm902_vm12 = vweird.f32 %v3684_v25  ;;  %v3015_v10 = vld [vmem:[#allocation10 + $0x9c] sm:$0xf0]  ;;  %v3001_v18 = vld [vmem:[#allocation10 + $0x78] sm:$0xf] }
 0x1a1   :  { %vm903_vm14 = vmor %vm901_vm13, %vm902_vm12  ;;  %v3018_v14 = vor.u32 %v3547_v7, %v3015_v10  ;;  %v2967_v7 = vld [vmem:[#allocation10 + $0x3c] sm:$0xf0]  ;;  %v2973_v10 = vld [vmem:[#allocation10 + $0x38] sm:$0xf] }
 0x1a2   :  { %v898_v9 = vsub.f32 1.0, %v897_v26  ;;  %v884_v28 = vsel %vm883_vm10, %v3682_v12, %v880_v40  ;;  %v3021_v12 = vld [vmem:[#allocation10 + $0x98] sm:$0xf]  ;;  %v3003_v26 = vld [vmem:[#allocation10 + $0x84] sm:$0xf0] }
 0x1a3   :  { %v889_v37 = vsel %vm886_vm11, %v888_v27, %v884_v28  ;;  %v3022_v16 = vor.u32 %v3549_v13, %v3021_v12  ;;  %1366 = vmatpush.bf16.msrb.mxu0 %v3018_v14  ;;  %v3009_v40 = vld [vmem:[#allocation10 + $0x80] sm:$0xf]  ;;  %v3546_v27 = vld [vmem:[#allocation10 + $0x88] sm:$0xf0]  ;;  %v3537_v12 = vld [vmem:[#allocation10 + $0x40] sm:$0xf0] }
 0x1a4   :  { %v899_v32 = vmul.f32 %v3684_v25, %v898_v9  ;;  %v916_v34 = vmul.f32 %v915_v29, %v889_v37  ;;  %v3006_v9 = vor.u32 %v3544_v21, %v3003_v26  ;;  %v3010_v28 = vor.u32 %v3546_v27, %v3009_v40  ;;  %v2989_v29 = vld [vmem:[#allocation10 + $0x60] sm:$0xf]  ;;  %v3542_v37 = vld [vmem:[#allocation10 + $0x68] sm:$0xf0]  ;;  %v2953_v13 = vld [vmem:[#allocation10 + $0x18] sm:$0xf] }
 0x1a5   :  { %1379 = vmatpush.bf16.msrb.mxu1 %v3022_v16  ;;  %v2990_v33 = vor.u32 %v3542_v37, %v2989_v29  ;;  %v2974_v14 = vor.u32 %v3537_v12, %v2973_v10  ;;  %v3533_v16 = vld [vmem:[#allocation10 + $0x20] sm:$0xf0]  ;;  %v3534_v26 = vld [vmem:[#allocation10 + $0x28] sm:$0xf0]  ;;  %v2941_v37 = vld [vmem:[#allocation10] sm:$0xf] }
 0x1a6   :  { %v917_v20 = vadd.f32 %v916_v34, %v4009_v36  ;;  %v900_v38 = vadd.f32 %v3684_v25, %v899_v32  ;;  %v3025_v36 = vld [vmem:[#allocation10 + $0xa8] sm:$0xf]  ;;  %v3541_v32 = vld [vmem:[#allocation10 + $0x64] sm:$0xf]  ;;  %v2991_v34 = vld [vmem:[#allocation10 + $0x6c] sm:$0xf0] }
 0x1a7   :  { %v3026_v52 = vor.u32 %v3551_v50, %v3025_v36  ;;  %1367 = vmatpush.bf16.msrb.mxu0 %v3006_v9  ;;  %v3538_v36 = vld [vmem:[#allocation10 + $0x4c] sm:$0xf]  ;;  %v2954_v9 = vor.u32 %v3533_v16, %v2953_v13 }
 0x1a8   :  { %3685 = vtanh.f32 %v917_v20  ;;  %v904_v41 = vsel %vm903_vm14, %v3684_v25, %v900_v38  ;;  %v3002_v25 = vor.u32 %v3545_v19, %v3001_v18  ;;  %v3543_v20 = vld [vmem:[#allocation10 + $0x70] sm:$0xf0]  ;;  %v338_v38 = vadd.f32 %v4051_v63, %v3995_v55  ;;  %v3532_v18 = vld [vmem:[#allocation10 + $0x1c] sm:$0xf]  ;;  %v2955_v19 = vld [vmem:[#allocation10 + $0x24] sm:$0xf0] }
 0x1a9   :  { %v909_v42 = vsel %vm906_vm15, %v908_v39, %v904_v41  ;;  %1352 = vmatpush.bf16.msrb.mxu3 %v3026_v52  ;;  %1380 = vmatpush.bf16.msrb.mxu1 %v3010_v28  ;;  %v2994_v39 = vor.u32 %v3541_v32, %v2991_v34  ;;  %v2998_v41 = vor.u32 %v3543_v20, %v2997_v35  ;;  %v2985_v52 = vld [vmem:[#allocation10 + $0x50] sm:$0xf]  ;;  %v3530_v32 = vld [vmem:[#allocation10 + $0x8] sm:$0xf0]  ;;  %v2949_v35 = vld [vmem:[#allocation10 + $0x8] sm:$0xf] }
 0x1aa   :  { %v919_v62 = vsub.f32 1.0, %v909_v42  ;;  %v921_v22 = vmul.f32 %v909_v42, %v4042_v58  ;;  %v3013_v58 = vld [vmem:[#allocation10 + $0x90] sm:$0xf]  ;;  %v2982_v63 = vor.u32 %v3538_v36, %v2979_v51  ;;  %v2986_v60 = vor.u32 %v3540_v53, %v2985_v52  ;;  %v3531_v20 = vld [vmem:[#allocation10 + $0x10] sm:$0xf0] }
 0x1ab   :  { %v3014_v8 = vor.u32 %v3548_v5, %v3013_v58  ;;  %1368 = vmatpush.bf16.msrb.mxu0 %v2994_v39  ;;  %v3536_v58 = vld [vmem:[#allocation10 + $0x38] sm:$0xf0]  ;;  %v3535_v5 = vld [vmem:[#allocation10 + $0x34] sm:$0xf]  ;;  %v2958_v28 = vor.u32 %v3532_v18, %v2955_v19  ;;  %v2943_v34 = vld [vmem:[#allocation10 + $0xc] sm:$0xf0] }
 0x1ad   :  { %1353 = vmatpush.bf16.msrb.mxu3 %v3014_v8  ;;  %1381 = vmatpush.bf16.msrb.mxu1 %v2998_v41  ;;  %v2970_v8 = vor.u32 %v3535_v5, %v2967_v7 }
 0x1ae   :  { %v3686_v43 = vpop.eup %3685 }
 0x1af   :  { %v920_v47 = vmul.f32 %v3686_v43, %v919_v62  ;;  %1369 = vmatpush.bf16.msrb.mxu0 %v2982_v63 }
 0x1b1   :  { %v4073_v49 = vadd.f32 %v921_v22, %v920_v47  ;;  %1354 = vmatpush.bf16.msrb.mxu3 %v3002_v25  ;;  %v2977_v22 = vld [vmem:[#allocation10 + $0x48] sm:$0xf]  ;;  %1382 = vmatpush.bf16.msrb.mxu1 %v2986_v60  ;;  %v2961_v25 = vld [vmem:[#allocation10 + $0x20] sm:$0xf]  ;;  %v3661_v60 = vld [vmem:[%s4173_s5] ss:$0 sm:$0xff] }
 0x1b2   :  { %v2962_v29 = vor.u32 %v3534_v26, %v2961_v25 }
 0x1b3   :  { %v923_v3 = vpack.c.bf16 %v4073_v49, %v4073_v49  ;;  %1370 = vmatpush.bf16.msrb.mxu0 %v2970_v8 }
 0x1b5   :  { %925 = vst [vmem:[#allocation12 + $0x4] sm:$0xf] %v923_v3  ;;  %1100 = vmatmul.bf16.vlgmr.msra.gmra.mxu0 %v923_v3  ;;  %1113 = vmatmul.bf16.vlgmr.msra.gmra.mxu1 %v923_v3 }
 0x1b6   :  { %1126 = vmatmul.bf16.vlgmr.msra.gmra.mxu2 %v923_v3  ;;  %1355 = vmatpush.bf16.msrb.mxu3 %v2990_v33  ;;  %v3539_v3 = vld [vmem:[#allocation10 + $0x50] sm:$0xf0]  ;;  %v3529_v33 = vld [vmem:[#allocation10 + $0x4] sm:$0xf] }
 0x1b7   :  { %v2978_v50 = vor.u32 %v3539_v3, %v2977_v22  ;;  %1383 = vmatpush.bf16.msrb.mxu1 %v2974_v14  ;;  %1371 = vmatpush.bf16.msrb.mxu0 %v2958_v28 }
 0x1ba   :  { %1356 = vmatpush.bf16.msrb.mxu3 %v2978_v50 }
 0x1bb   :  { %1384 = vmatpush.bf16.msrb.mxu1 %v2962_v29  ;;  %v3575_v29 = vld [vmem:[#allocation10 + $0xb0] sm:$0xf0] }
 0x232   :  { %v1101_v42 = vpop.f32.mrf.mxu0  ;;  %v1114_v62 = vpop.f32.mrf.mxu1 }
 0x233   :  { %v1131_v43 = vadd.f32 %v1101_v42, %v3990_v45  ;;  %v1151_v47 = vadd.f32 %v1114_v62, %v338_v38  ;;  %v2966_v45 = vor.u32 %v3536_v58, %v2965_v4  ;;  %v2942_v42 = vor.u32 %v3530_v32, %v2941_v37  ;;  %v3574_v37 = vld [vmem:[#allocation10 + $0xac] sm:$0xf] }
 0x235   :  { %v2937_v56 = vmul.f32 -1.442695, %v1131_v43  ;;  %v2938_v59 = vmul.f32 -1.442695, %v1151_v47  ;;  %1357 = vmatpush.bf16.msrb.mxu3 %v2966_v45  ;;  %v2946_v43 = vor.u32 %v3529_v33, %v2943_v34  ;;  %v2950_v47 = vor.u32 %v3531_v20, %v2949_v35  ;;  %v3125_v33 = vld [vmem:[#allocation10 + $0xb4] sm:$0xf0] }
 0x236   :  { %v3131_v34 = vld [vmem:[#allocation10 + $0xb0] sm:$0xf]  ;;  %v3576_v35 = vld [vmem:[#allocation10 + $0xb8] sm:$0xf0]  ;;  %v3128_v20 = vor.u32 %v3574_v37, %v3125_v33 }
 0x237   :  { %3687 = vpow2.f32 %v2937_v56  ;;  %1372 = vmatpush.bf16.msrb.mxu0 %v2946_v43  ;;  %1385 = vmatpush.bf16.msrb.mxu1 %v2950_v47  ;;  %v3119_v43 = vld [vmem:[#allocation10 + $0x98] sm:$0xf]  ;;  %v3573_v47 = vld [vmem:[#allocation10 + $0xa0] sm:$0xf0]  ;;  %v3063_v33 = vld [vmem:[#allocation10 + $0x30] sm:$0xf] }
 0x238   :  { %3689 = vpow2.f32 %v2938_v59 }
 0x239   :  { %v1127_v21 = vpop.f32.mrf.mxu2  ;;  %1358 = vmatpush.bf16.msrb.mxu3 %v2954_v9 }
 0x23a   :  { %v1103_v40 = vpop.f32.mrf.mxu0  ;;  %v1116_v27 = vpop.f32.mrf.mxu1  ;;  %v1175_v45 = vadd.f32 %v3661_v60, %v1127_v21  ;;  %v3570_v60 = vld [vmem:[#allocation10 + $0x88] sm:$0xf0] }
 0x23d   :  { %v3688_v38 = vpop.eup %3687  ;;  %1359 = vmatpush.bf16.msrb.mxu3 %v2942_v42 }
 0x23e   :  { %v3690_v39 = vpop.eup %3689  ;;  %v1135_v41 = vadd.f32 1.0, %v3688_v38  ;;  %v3132_v38 = vor.u32 %v3576_v35, %v3131_v34  ;;  %v3560_v34 = vld [vmem:[#allocation10 + $0x38] sm:$0xf0] }
 0x23f   :  { %v1155_v62 = vadd.f32 1.0, %v3690_v39  ;;  %v3572_v39 = vld [vmem:[#allocation10 + $0x98] sm:$0xf0] }
 0x240   :  { %3691 = vrcp.f32 %v1135_v41  ;;  %v1147_v56 = vand.u32 2147483648, %v1135_v41  ;;  %v1145_v63 = vand.u32 2147483647, %v1135_v41  ;;  %vm1141_vm1 = vweird.f32 %v1135_v41  ;;  %1638 = vmatpush.bf16.msra.mxu0 %v3132_v38  ;;  %v3559_v38 = vld [vmem:[#allocation10 + $0x34] sm:$0xf] }
 0x241   :  { %3693 = vrcp.f32 %v1155_v62  ;;  %v1129_v22 = vpop.f32.mrf.mxu2  ;;  %v1167_v12 = vand.u32 2147483648, %v1155_v62  ;;  %vm1161_vm5 = vweird.f32 %v1155_v62  ;;  %v1165_v14 = vand.u32 2147483647, %v1155_v62  ;;  %1625 = vmatpush.bf16.msra.mxu3 %v3128_v20 }
 0x242   :  { %v1148_v5 = vor.u32 1.1754944e-38, %v1147_v56  ;;  %vm1146_vm3 = vcmp.eq.f32.partialorder %v1145_v63, 8.507059e+37  ;;  %v3107_v63 = vld [vmem:[#allocation10 + $0x80] sm:$0xf] }
 0x243   :  { %v1168_v19 = vor.u32 1.1754944e-38, %v1167_v12  ;;  %vm1166_vm7 = vcmp.eq.f32.partialorder %v1165_v14, 8.507059e+37  ;;  %v3565_v12 = vld [vmem:[#allocation10 + $0x64] sm:$0xf]  ;;  %v3095_v14 = vld [vmem:[#allocation10 + $0x68] sm:$0xf] }
 0x246   :  { %v3692_v3 = vpop.eup %3691 }
 0x247   :  { %v3694_v36 = vpop.eup %3693  ;;  %v1137_v50 = vmul.f32 %v3692_v3, %v1135_v41  ;;  %vm1142_vm0 = vweird.f32 %v3692_v3  ;;  %v3571_v41 = vld [vmem:[#allocation10 + $0x94] sm:$0xf] }
 0x248   :  { %v1157_v51 = vmul.f32 %v3694_v36, %v1155_v62  ;;  %vm1143_vm2 = vmor %vm1141_vm1, %vm1142_vm0  ;;  %vm1162_vm4 = vweird.f32 %v3694_v36  ;;  %v3113_v62 = vld [vmem:[#allocation10 + $0x9c] sm:$0xf0] }
 0x249   :  { %v1138_v52 = vsub.f32 1.0, %v1137_v50  ;;  %vm1163_vm6 = vmor %vm1161_vm5, %vm1162_vm4  ;;  %v3116_v22 = vor.u32 %v3571_v41, %v3113_v62  ;;  %v3099_v50 = vld [vmem:[#allocation10 + $0x78] sm:$0xf]  ;;  %v3561_v62 = vld [vmem:[#allocation10 + $0x40] sm:$0xf0] }
 0x24a   :  { %v1158_v53 = vsub.f32 1.0, %v1157_v51  ;;  %v3569_v51 = vld [vmem:[#allocation10 + $0x80] sm:$0xf0] }
 0x24b   :  { %v1139_v59 = vmul.f32 %v3692_v3, %v1138_v52  ;;  %1626 = vmatpush.bf16.msra.mxu3 %v3116_v22  ;;  %v3568_v52 = vld [vmem:[#allocation10 + $0x7c] sm:$0xf]  ;;  %v3100_v56 = vor.u32 %v3569_v51, %v3099_v50  ;;  %v3051_v22 = vld [vmem:[#allocation10 + $0x18] sm:$0xf] }
 0x24c   :  { %v1159_v4 = vmul.f32 %v3694_v36, %v1158_v53  ;;  %v3556_v51 = vld [vmem:[#allocation10 + $0x1c] sm:$0xf] }
 0x24d   :  { %v1140_v58 = vadd.f32 %v3692_v3, %v1139_v59  ;;  %v3101_v59 = vld [vmem:[#allocation10 + $0x84] sm:$0xf0] }
 0x24e   :  { %v1160_v10 = vadd.f32 %v3694_v36, %v1159_v4 }
 0x24f   :  { %v1144_v7 = vsel %vm1143_vm2, %v3692_v3, %v1140_v58  ;;  %v3120_v3 = vor.u32 %v3573_v47, %v3119_v43  ;;  %v3064_v43 = vor.u32 %v3560_v34, %v3063_v33 }
 0x250   :  { %v1149_v8 = vsel %vm1146_vm3, %v1148_v5, %v1144_v7  ;;  %v1164_v18 = vsel %vm1163_vm6, %v3694_v36, %v1160_v10  ;;  %v340_v36 = vadd.f32 %v4053_v6, %v3995_v55  ;;  %v3104_v5 = vor.u32 %v3568_v52, %v3101_v59  ;;  %v3087_v6 = vld [vmem:[#allocation10 + $0x60] sm:$0xf]  ;;  %v3053_v52 = vld [vmem:[#allocation10 + $0x24] sm:$0xf0] }
 0x251   :  { %v1176_v13 = vmul.f32 %v1175_v45, %v1149_v8  ;;  %v1169_v25 = vsel %vm1166_vm7, %v1168_v19, %v1164_v18  ;;  %1639 = vmatpush.bf16.msra.mxu0 %v3120_v3  ;;  %v3108_v7 = vor.u32 %v3570_v60, %v3107_v63  ;;  %v3566_v8 = vld [vmem:[#allocation10 + $0x68] sm:$0xf0]  ;;  %v3567_v18 = vld [vmem:[#allocation10 + $0x70] sm:$0xf0]  ;;  %v3075_v19 = vld [vmem:[#allocation10 + $0x48] sm:$0xf]  ;;  %v3056_v60 = vor.u32 %v3556_v51, %v3053_v52 }
 0x252   :  { %v1179_v26 = vsub.f32 1.0, %v1169_v25  ;;  %v1181_v21 = vmul.f32 %v1169_v25, %v4073_v49  ;;  %v3111_v49 = vld [vmem:[#allocation10 + $0x90] sm:$0xf]  ;;  %1627 = vmatpush.bf16.msra.mxu3 %v3104_v5  ;;  %v3088_v10 = vor.u32 %v3566_v8, %v3087_v6  ;;  %v3563_v25 = vld [vmem:[#allocation10 + $0x50] sm:$0xf0] }
 0x253   :  { %v1177_v16 = vadd.f32 %v1176_v13, %v4019_v15  ;;  %v3123_v15 = vld [vmem:[#allocation10 + $0xa8] sm:$0xf]  ;;  %v3112_v42 = vor.u32 %v3572_v39, %v3111_v49  ;;  %v3089_v13 = vld [vmem:[#allocation10 + $0x6c] sm:$0xf0]  ;;  %v3065_v49 = vld [vmem:[#allocation10 + $0x3c] sm:$0xf0] }
 0x254   :  { %v3124_v32 = vor.u32 %v3575_v29, %v3123_v15  ;;  %v3083_v15 = vld [vmem:[#allocation10 + $0x50] sm:$0xf]  ;;  %v3557_v3 = vld [vmem:[#allocation10 + $0x20] sm:$0xf0]  ;;  %v3554_v5 = vld [vmem:[#allocation10 + $0x8] sm:$0xf0] }
 0x255   :  { %3695 = vtanh.f32 %v1177_v16  ;;  %1640 = vmatpush.bf16.msra.mxu0 %v3108_v7  ;;  %v3092_v16 = vor.u32 %v3565_v12, %v3089_v13  ;;  %v3052_v63 = vor.u32 %v3557_v3, %v3051_v22  ;;  %v3041_v6 = vld [vmem:[#allocation10 + $0xc] sm:$0xf0]  ;;  %v3555_v12 = vld [vmem:[#allocation10 + $0x10] sm:$0xf0] }
 0x256   :  { %1612 = vmatpush.bf16.msrb.mxu2 %v3124_v32  ;;  %v3564_v32 = vld [vmem:[#allocation10 + $0x58] sm:$0xf0] }
 0x257   :  { %1628 = vmatpush.bf16.msra.mxu3 %v3092_v16  ;;  %v3084_v20 = vor.u32 %v3564_v32, %v3083_v15  ;;  %v3662_v15 = vld [vmem:[%s4173_s5] ss:$0 sm:$0xff] }
 0x25a   :  { %1613 = vmatpush.bf16.msrb.mxu2 %v3112_v42  ;;  %v3071_v42 = vld [vmem:[#allocation10 + $0x38] sm:$0xf] }
 0x25b   :  { %v3696_v40 = vpop.eup %3695  ;;  %v3072_v50 = vor.u32 %v3561_v62, %v3071_v42 }
 0x25c   :  { %v1180_v27 = vmul.f32 %v3696_v40, %v1179_v26  ;;  %v3096_v40 = vor.u32 %v3567_v18, %v3095_v14 }
 0x25e   :  { %v4085_v9 = vadd.f32 %v1181_v21, %v1180_v27  ;;  %1614 = vmatpush.bf16.msrb.mxu2 %v3100_v56  ;;  %v3076_v27 = vor.u32 %v3563_v25, %v3075_v19  ;;  %v3562_v21 = vld [vmem:[#allocation10 + $0x4c] sm:$0xf]  ;;  %1641 = vmatpush.bf16.msra.mxu0 %v3096_v40 }
 0x25f   :  { %v3558_v56 = vld [vmem:[#allocation10 + $0x28] sm:$0xf0] }
 0x260   :  { %v1183_v28 = vpack.c.bf16 %v4085_v9, %v4085_v9 }
 0x262   :  { %1185 = vst [vmem:[#allocation12 + $0x8] sm:$0xf] %v1183_v28  ;;  %1360 = vmatmul.bf16.vlgmr.msrb.gmra.mxu3 %v1183_v28  ;;  %1373 = vmatmul.bf16.vlgmr.msrb.gmra.mxu0 %v1183_v28 }
 0x263   :  { %1386 = vmatmul.bf16.vlgmr.msrb.gmra.mxu1 %v1183_v28  ;;  %1615 = vmatpush.bf16.msrb.mxu2 %v3088_v10  ;;  %v3077_v28 = vld [vmem:[#allocation10 + $0x54] sm:$0xf0]  ;;  %v3047_v10 = vld [vmem:[#allocation10 + $0x8] sm:$0xf] }
 0x264   :  { %v3080_v37 = vor.u32 %v3562_v21, %v3077_v28  ;;  %1642 = vmatpush.bf16.msra.mxu0 %v3084_v20  ;;  %v3048_v18 = vor.u32 %v3555_v12, %v3047_v10  ;;  %v3217_v10 = vld [vmem:[#allocation10 + $0x98] sm:$0xf]  ;;  %v3597_v12 = vld [vmem:[#allocation10 + $0xa0] sm:$0xf0] }
 0x266   :  { %1629 = vmatpush.bf16.msra.mxu3 %v3080_v37 }
 0x267   :  { %1616 = vmatpush.bf16.msrb.mxu2 %v3076_v27 }
 0x268   :  { %1643 = vmatpush.bf16.msra.mxu0 %v3072_v50 }
 0x26b   :  { %1617 = vmatpush.bf16.msrb.mxu2 %v3064_v43 }
 0x26f   :  { %1618 = vmatpush.bf16.msrb.mxu2 %v3052_v63  ;;  %v3229_v63 = vld [vmem:[#allocation10 + $0xb0] sm:$0xf] }
 0x2df   :  { %v1374_v53 = vpop.f32.mrf.mxu0 }
 0x2e0   :  { %v1411_v4 = vadd.f32 %v1374_v53, %v340_v36  ;;  %v4091_v58 = vpop.f32.mrf.mxu1  ;;  %v3059_v53 = vld [vmem:[#allocation10 + $0x20] sm:$0xf] }
 0x2e1   :  { %v3060_v7 = vor.u32 %v3558_v56, %v3059_v53  ;;  %v3598_v53 = vld [vmem:[#allocation10 + $0xac] sm:$0xf] }
 0x2e2   :  { %v3036_v45 = vmul.f32 -1.442695, %v1411_v4  ;;  %v3039_v4 = vld [vmem:[#allocation10] sm:$0xf] }
 0x2e3   :  { %v3040_v14 = vor.u32 %v3554_v5, %v3039_v4  ;;  %1644 = vmatpush.bf16.msra.mxu0 %v3060_v7  ;;  %v3596_v7 = vld [vmem:[#allocation10 + $0x98] sm:$0xf0] }
 0x2e4   :  { %3697 = vpow2.f32 %v3036_v45  ;;  %v3553_v45 = vld [vmem:[#allocation10 + $0x4] sm:$0xf] }
 0x2e5   :  { %v1361_v26 = vpop.f32.mrf.mxu3  ;;  %v3044_v16 = vor.u32 %v3553_v45, %v3041_v6  ;;  %1619 = vmatpush.bf16.msrb.mxu2 %v3040_v14  ;;  %v3595_v45 = vld [vmem:[#allocation10 + $0x94] sm:$0xf]  ;;  %v3218_v14 = vor.u32 %v3597_v12, %v3217_v10  ;;  %v3580_v10 = vld [vmem:[#allocation10 + $0x1c] sm:$0xf]  ;;  %v3151_v12 = vld [vmem:[#allocation10 + $0x24] sm:$0xf0] }
 0x2e6   :  { %v1391_v29 = vadd.f32 %v1361_v26, %v3993_v54  ;;  %v3068_v54 = vor.u32 %v3559_v38, %v3065_v49 }
 0x2e7   :  { %v1376_v35 = vpop.f32.mrf.mxu0  ;;  %1645 = vmatpush.bf16.msra.mxu0 %v3048_v18  ;;  %v3593_v18 = vld [vmem:[#allocation10 + $0x80] sm:$0xf0] }
 0x2e8   :  { %v3035_v39 = vmul.f32 -1.442695, %v1391_v29  ;;  %v1389_v41 = vpop.f32.mrf.mxu1  ;;  %1630 = vmatpush.bf16.msra.mxu3 %v3068_v54  ;;  %v1435_v35 = vadd.f32 %v3662_v15, %v4091_v58 }
 0x2ea   :  { %v3698_v47 = vpop.eup %3697  ;;  %3699 = vpow2.f32 %v3035_v39 }
 0x2eb   :  { %v4094_v36 = vadd.f32 1.0, %v3698_v47 }
 0x2ec   :  { %1631 = vmatpush.bf16.msra.mxu3 %v3056_v60  ;;  %v3600_v60 = vld [vmem:[#allocation10 + $0xb8] sm:$0xf0] }
 0x2ed   :  { %v1363_v59 = vpop.f32.mrf.mxu3  ;;  %3701 = vrcp.f32 %v4094_v36  ;;  %v1427_v39 = vand.u32 2147483648, %v4094_v36  ;;  %vm1421_vm13 = vweird.f32 %v4094_v36  ;;  %v1425_v42 = vand.u32 2147483647, %v4094_v36 }
 0x2ee   :  { %v3223_v59 = vld [vmem:[#allocation10 + $0xb4] sm:$0xf0]  ;;  %v3230_v5 = vor.u32 %v3600_v60, %v3229_v63  ;;  %v3585_v60 = vld [vmem:[#allocation10 + $0x40] sm:$0xf0] }
 0x2ef   :  { %v1428_v47 = vor.u32 1.1754944e-38, %v1427_v39  ;;  %vm1426_vm15 = vcmp.eq.f32.partialorder %v1425_v42, 8.507059e+37  ;;  %v3226_v4 = vor.u32 %v3598_v53, %v3223_v59  ;;  %v3587_v42 = vld [vmem:[#allocation10 + $0x50] sm:$0xf0]  ;;  %v3163_v59 = vld [vmem:[#allocation10 + $0x3c] sm:$0xf0] }
 0x2f0   :  { %v3700_v8 = vpop.eup %3699  ;;  %1632 = vmatpush.bf16.msra.mxu3 %v3044_v16  ;;  %v3197_v16 = vld [vmem:[#allocation10 + $0x78] sm:$0xf]  ;;  %v3583_v53 = vld [vmem:[#allocation10 + $0x34] sm:$0xf] }
 0x2f1   :  { %v1395_v13 = vadd.f32 1.0, %v3700_v8  ;;  %1885 = vmatpush.bf16.msra.mxu2 %v3226_v4  ;;  %v3211_v8 = vld [vmem:[#allocation10 + $0x9c] sm:$0xf0]  ;;  %v3169_v63 = vld [vmem:[#allocation10 + $0x38] sm:$0xf] }
 0x2f3   :  { %3703 = vrcp.f32 %v1395_v13  ;;  %v3702_v19 = vpop.eup %3701  ;;  %v1407_v28 = vand.u32 2147483648, %v1395_v13  ;;  %v1405_v37 = vand.u32 2147483647, %v1395_v13  ;;  %vm1401_vm9 = vweird.f32 %v1395_v13 }
 0x2f4   :  { %v1417_v25 = vmul.f32 %v3702_v19, %v4094_v36  ;;  %vm1422_vm12 = vweird.f32 %v3702_v19  ;;  %v3599_v36 = vld [vmem:[#allocation10 + $0xb0] sm:$0xf0]  ;;  %1898 = vmatpush.bf16.msrb.mxu3 %v3230_v5 }
 0x2f5   :  { %v1408_v34 = vor.u32 1.1754944e-38, %v1407_v28  ;;  %vm1406_vm11 = vcmp.eq.f32.partialorder %v1405_v37, 8.507059e+37  ;;  %vm1423_vm14 = vmor %vm1421_vm13, %vm1422_vm12  ;;  %v3590_v37 = vld [vmem:[#allocation10 + $0x68] sm:$0xf0] }
 0x2f6   :  { %v1418_v27 = vsub.f32 1.0, %v1417_v25  ;;  %v3198_v25 = vor.u32 %v3593_v18, %v3197_v16 }
 0x2f8   :  { %v1419_v32 = vmul.f32 %v3702_v19, %v1418_v27  ;;  %1899 = vmatpush.bf16.msrb.mxu3 %v3218_v14  ;;  %v3594_v27 = vld [vmem:[#allocation10 + $0x88] sm:$0xf0] }
 0x2f9   :  { %v3704_v26 = vpop.eup %3703  ;;  %v3582_v14 = vld [vmem:[#allocation10 + $0x28] sm:$0xf0] }
 0x2fa   :  { %v1397_v40 = vmul.f32 %v3704_v26, %v1395_v13  ;;  %vm1402_vm8 = vweird.f32 %v3704_v26  ;;  %v1420_v49 = vadd.f32 %v3702_v19, %v1419_v32  ;;  %v3214_v13 = vor.u32 %v3595_v45, %v3211_v8  ;;  %v3589_v32 = vld [vmem:[#allocation10 + $0x64] sm:$0xf] }
 0x2fb   :  { %vm1403_vm10 = vmor %vm1401_vm9, %vm1402_vm8  ;;  %v3170_v45 = vor.u32 %v3585_v60, %v3169_v63  ;;  %v3581_v8 = vld [vmem:[#allocation10 + $0x20] sm:$0xf0] }
 0x2fc   :  { %v1398_v21 = vsub.f32 1.0, %v1397_v40  ;;  %v1424_v43 = vsel %vm1423_vm14, %v3702_v19, %v1420_v49  ;;  %1886 = vmatpush.bf16.msra.mxu2 %v3214_v13  ;;  %v3592_v19 = vld [vmem:[#allocation10 + $0x7c] sm:$0xf]  ;;  %v3205_v40 = vld [vmem:[#allocation10 + $0x80] sm:$0xf] }
 0x2fd   :  { %v1429_v58 = vsel %vm1426_vm15, %v1428_v47, %v1424_v43  ;;  %v3206_v15 = vor.u32 %v3594_v27, %v3205_v40  ;;  %v3157_v13 = vld [vmem:[#allocation10 + $0x20] sm:$0xf]  ;;  %v3578_v27 = vld [vmem:[#allocation10 + $0x8] sm:$0xf0] }
 0x2fe   :  { %v1399_v29 = vmul.f32 %v3704_v26, %v1398_v21  ;;  %v1439_v54 = vsub.f32 1.0, %v1429_v58  ;;  %v1441_v50 = vmul.f32 %v1429_v58, %v4085_v9  ;;  %v3209_v9 = vld [vmem:[#allocation10 + $0x90] sm:$0xf]  ;;  %v3137_v40 = vld [vmem:[#allocation10] sm:$0xf] }
 0x2ff   :  { %v3210_v6 = vor.u32 %v3596_v7, %v3209_v9  ;;  %1900 = vmatpush.bf16.msrb.mxu3 %v3206_v15  ;;  %v3139_v15 = vld [vmem:[#allocation10 + $0xc] sm:$0xf0] }
 0x300   :  { %v1400_v33 = vadd.f32 %v3704_v26, %v1399_v29  ;;  %v3185_v29 = vld [vmem:[#allocation10 + $0x60] sm:$0xf] }
 0x302   :  { %v1404_v20 = vsel %vm1403_vm10, %v3704_v26, %v1400_v33  ;;  %v3199_v26 = vld [vmem:[#allocation10 + $0x84] sm:$0xf0]  ;;  %v3186_v33 = vor.u32 %v3590_v37, %v3185_v29  ;;  %v3579_v37 = vld [vmem:[#allocation10 + $0x10] sm:$0xf0] }
 0x303   :  { %v1409_v38 = vsel %vm1406_vm11, %v1408_v34, %v1404_v20  ;;  %v3202_v28 = vor.u32 %v3592_v19, %v3199_v26  ;;  %v3187_v34 = vld [vmem:[#allocation10 + $0x6c] sm:$0xf0]  ;;  %v3591_v20 = vld [vmem:[#allocation10 + $0x70] sm:$0xf0]  ;;  %v3158_v26 = vor.u32 %v3582_v14, %v3157_v13  ;;  %v3145_v29 = vld [vmem:[#allocation10 + $0x8] sm:$0xf] }
 0x304   :  { %v1436_v41 = vmul.f32 %v1435_v35, %v1409_v38  ;;  %v3193_v35 = vld [vmem:[#allocation10 + $0x68] sm:$0xf]  ;;  %v343_v38 = vadd.f32 %v4055_v0, %v3995_v55  ;;  %v3190_v49 = vor.u32 %v3589_v32, %v3187_v34  ;;  %v3584_v0 = vld [vmem:[#allocation10 + $0x38] sm:$0xf0]  ;;  %v3622_v13 = vld [vmem:[#allocation10 + $0xac] sm:$0xf] }
 0x305   :  { %1887 = vmatpush.bf16.msra.mxu2 %v3202_v28  ;;  %v3194_v39 = vor.u32 %v3591_v20, %v3193_v35  ;;  %v3577_v28 = vld [vmem:[#allocation10 + $0x4] sm:$0xf]  ;;  %v3138_v35 = vor.u32 %v3578_v27, %v3137_v40  ;;  %v3620_v40 = vld [vmem:[#allocation10 + $0x98] sm:$0xf0]  ;;  %v3619_v27 = vld [vmem:[#allocation10 + $0x94] sm:$0xf] }
 0x306   :  { %v1437_v62 = vadd.f32 %v1436_v41, %v4031_v31  ;;  %v3221_v31 = vld [vmem:[#allocation10 + $0xa8] sm:$0xf] }
 0x307   :  { %v3222_v56 = vor.u32 %v3599_v36, %v3221_v31  ;;  %v3173_v41 = vld [vmem:[#allocation10 + $0x48] sm:$0xf]  ;;  %1901 = vmatpush.bf16.msrb.mxu3 %v3194_v39  ;;  %v3161_v36 = vld [vmem:[#allocation10 + $0x30] sm:$0xf] }
 0x308   :  { %3705 = vtanh.f32 %v1437_v62  ;;  %v3586_v62 = vld [vmem:[#allocation10 + $0x4c] sm:$0xf]  ;;  %v3174_v58 = vor.u32 %v3587_v42, %v3173_v41  ;;  %v3162_v7 = vor.u32 %v3584_v0, %v3161_v36 }
 0x309   :  { %1872 = vmatpush.bf16.msra.mxu1 %v3222_v56  ;;  %1888 = vmatpush.bf16.msra.mxu2 %v3190_v49  ;;  %v3146_v49 = vor.u32 %v3579_v37, %v3145_v29  ;;  %v3315_v29 = vld [vmem:[#allocation10 + $0x98] sm:$0xf]  ;;  %v3621_v37 = vld [vmem:[#allocation10 + $0xa0] sm:$0xf0] }
 0x30d   :  { %1873 = vmatpush.bf16.msra.mxu1 %v3210_v6  ;;  %v3149_v6 = vld [vmem:[#allocation10 + $0x18] sm:$0xf] }
 0x30e   :  { %v3706_v22 = vpop.eup %3705  ;;  %v3150_v19 = vor.u32 %v3581_v8, %v3149_v6 }
 0x30f   :  { %v1440_v3 = vmul.f32 %v3706_v22, %v1439_v54  ;;  %v3175_v54 = vld [vmem:[#allocation10 + $0x54] sm:$0xf0]  ;;  %v3181_v22 = vld [vmem:[#allocation10 + $0x50] sm:$0xf] }
 0x310   :  { %v3178_v31 = vor.u32 %v3586_v62, %v3175_v54  ;;  %v3663_v54 = vld [vmem:[%s4173_s5] ss:$0 sm:$0xff] }
 0x311   :  { %v4107_v51 = vadd.f32 %v1441_v50, %v1440_v3  ;;  %1874 = vmatpush.bf16.msra.mxu1 %v3198_v25  ;;  %v3588_v3 = vld [vmem:[#allocation10 + $0x58] sm:$0xf0]  ;;  %v3154_v25 = vor.u32 %v3580_v10, %v3151_v12  ;;  %v3623_v12 = vld [vmem:[#allocation10 + $0xb0] sm:$0xf0] }
 0x312   :  { %v3182_v56 = vor.u32 %v3588_v3, %v3181_v22  ;;  %1889 = vmatpush.bf16.msra.mxu2 %v3178_v31 }
 0x313   :  { %v1443_v52 = vpack.c.bf16 %v4107_v51, %v4107_v51 }
 0x314   :  { %1902 = vmatpush.bf16.msrb.mxu3 %v3182_v56 }
 0x315   :  { %1445 = vst [vmem:[#allocation12 + $0xc] sm:$0xf] %v1443_v52  ;;  %1620 = vmatmul.bf16.vlgmr.msrb.gmra.mxu2 %v1443_v52  ;;  %1633 = vmatmul.bf16.vlgmr.msra.gmra.mxu3 %v1443_v52 }
 0x316   :  { %1646 = vmatmul.bf16.vlgmr.msra.gmra.mxu0 %v1443_v52  ;;  %1875 = vmatpush.bf16.msra.mxu1 %v3186_v33 }
 0x318   :  { %1903 = vmatpush.bf16.msrb.mxu3 %v3170_v45 }
 0x31a   :  { %1876 = vmatpush.bf16.msra.mxu1 %v3174_v58 }
 0x31c   :  { %1904 = vmatpush.bf16.msrb.mxu3 %v3158_v26 }
 0x31e   :  { %1877 = vmatpush.bf16.msra.mxu1 %v3162_v7 }
 0x320   :  { %1905 = vmatpush.bf16.msrb.mxu3 %v3146_v49  ;;  %v3297_v49 = vld [vmem:[#allocation10 + $0x84] sm:$0xf0] }
 0x322   :  { %1878 = vmatpush.bf16.msra.mxu1 %v3150_v19  ;;  %v3624_v19 = vld [vmem:[#allocation10 + $0xb8] sm:$0xf0] }
 0x326   :  { %1879 = vmatpush.bf16.msra.mxu1 %v3138_v35  ;;  %v3617_v35 = vld [vmem:[#allocation10 + $0x80] sm:$0xf0] }
 0x393   :  { %v4111_v21 = vpop.f32.mrf.mxu0 }
 0x394   :  { %v1695_v36 = vadd.f32 %v3663_v54, %v4111_v21 }
 0x398   :  { %v1621_v43 = vpop.f32.mrf.mxu2  ;;  %v1634_v47 = vpop.f32.mrf.mxu3 }
 0x399   :  { %v1651_v50 = vadd.f32 %v1621_v43, %v4000_v17  ;;  %v1671_v52 = vadd.f32 %v1634_v47, %v343_v38  ;;  %v3166_v17 = vor.u32 %v3583_v53, %v3163_v59  ;;  %v3142_v38 = vor.u32 %v3577_v28, %v3139_v15  ;;  %v3309_v15 = vld [vmem:[#allocation10 + $0x9c] sm:$0xf0] }
 0x39b   :  { %v3133_v4 = vmul.f32 -1.442695, %v1651_v50  ;;  %v3134_v5 = vmul.f32 -1.442695, %v1671_v52  ;;  %v1649_v9 = vpop.f32.mrf.mxu0  ;;  %1890 = vmatpush.bf16.msra.mxu2 %v3166_v17 }
 0x39d   :  { %3707 = vpow2.f32 %v3133_v4 }
 0x39e   :  { %3709 = vpow2.f32 %v3134_v5 }
 0x39f   :  { %1891 = vmatpush.bf16.msra.mxu2 %v3154_v25 }
 0x3a0   :  { %v1623_v16 = vpop.f32.mrf.mxu2  ;;  %v1636_v18 = vpop.f32.mrf.mxu3 }
 0x3a1   :  { %v3321_v16 = vld [vmem:[#allocation10 + $0xb4] sm:$0xf0]  ;;  %v3327_v18 = vld [vmem:[#allocation10 + $0xb0] sm:$0xf] }
 0x3a2   :  { %v3324_v25 = vor.u32 %v3622_v13, %v3321_v16  ;;  %v3328_v26 = vor.u32 %v3624_v19, %v3327_v18  ;;  %v3247_v16 = vld [vmem:[#allocation10 + $0x18] sm:$0xf]  ;;  %v3605_v18 = vld [vmem:[#allocation10 + $0x20] sm:$0xf0] }
 0x3a3   :  { %v3708_v32 = vpop.eup %3707  ;;  %1892 = vmatpush.bf16.msra.mxu2 %v3142_v38 }
 0x3a4   :  { %v3710_v33 = vpop.eup %3709  ;;  %v1655_v34 = vadd.f32 1.0, %v3708_v32  ;;  %2145 = vmatpush.bf16.msrb.mxu1 %v3324_v25  ;;  %v3312_v32 = vor.u32 %v3619_v27, %v3309_v15  ;;  %v3606_v15 = vld [vmem:[#allocation10 + $0x28] sm:$0xf0] }
 0x3a5   :  { %v1675_v20 = vadd.f32 1.0, %v3710_v33  ;;  %v3316_v33 = vor.u32 %v3621_v37, %v3315_v29  ;;  %v3248_v37 = vor.u32 %v3605_v18, %v3247_v16 }
 0x3a6   :  { %3711 = vrcp.f32 %v1655_v34  ;;  %v1667_v47 = vand.u32 2147483648, %v1655_v34  ;;  %v1665_v3 = vand.u32 2147483647, %v1655_v34  ;;  %vm1661_vm1 = vweird.f32 %v1655_v34 }
 0x3a7   :  { %3713 = vrcp.f32 %v1675_v20  ;;  %v1687_v63 = vand.u32 2147483648, %v1675_v20  ;;  %vm1681_vm5 = vweird.f32 %v1675_v20  ;;  %v1685_v60 = vand.u32 2147483647, %v1675_v20  ;;  %2158 = vmatpush.bf16.msrb.mxu2 %v3328_v26  ;;  %v3604_v26 = vld [vmem:[#allocation10 + $0x1c] sm:$0xf] }
 0x3a8   :  { %v1668_v31 = vor.u32 1.1754944e-38, %v1667_v47  ;;  %vm1666_vm3 = vcmp.eq.f32.partialorder %v1665_v3, 8.507059e+37  ;;  %2146 = vmatpush.bf16.msrb.mxu1 %v3312_v32  ;;  %v3614_v47 = vld [vmem:[#allocation10 + $0x68] sm:$0xf0]  ;;  %v3291_v3 = vld [vmem:[#allocation10 + $0x68] sm:$0xf] }
 0x3a9   :  { %v1688_v9 = vor.u32 1.1754944e-38, %v1687_v63  ;;  %vm1686_vm7 = vcmp.eq.f32.partialorder %v1685_v60, 8.507059e+37  ;;  %v3273_v60 = vld [vmem:[#allocation10 + $0x54] sm:$0xf0]  ;;  %v3235_v32 = vld [vmem:[#allocation10] sm:$0xf] }
 0x3ab   :  { %2159 = vmatpush.bf16.msrb.mxu2 %v3316_v33 }
 0x3ac   :  { %v3712_v39 = vpop.eup %3711 }
 0x3ad   :  { %v3714_v41 = vpop.eup %3713  ;;  %v1657_v42 = vmul.f32 %v3712_v39, %v1655_v34  ;;  %vm1662_vm0 = vweird.f32 %v3712_v39  ;;  %v3295_v34 = vld [vmem:[#allocation10 + $0x78] sm:$0xf] }
 0x3ae   :  { %v1677_v62 = vmul.f32 %v3714_v41, %v1675_v20  ;;  %vm1663_vm2 = vmor %vm1661_vm1, %vm1662_vm0  ;;  %vm1682_vm4 = vweird.f32 %v3714_v41  ;;  %v3616_v20 = vld [vmem:[#allocation10 + $0x7c] sm:$0xf]  ;;  %v3296_v38 = vor.u32 %v3617_v35, %v3295_v34  ;;  %v3602_v35 = vld [vmem:[#allocation10 + $0x8] sm:$0xf0] }
 0x3af   :  { %v1658_v43 = vsub.f32 1.0, %v1657_v42  ;;  %vm1683_vm6 = vmor %vm1681_vm5, %vm1682_vm4  ;;  %v3300_v42 = vor.u32 %v3616_v20, %v3297_v49  ;;  %v3601_v20 = vld [vmem:[#allocation10 + $0x4] sm:$0xf]  ;;  %v3243_v49 = vld [vmem:[#allocation10 + $0x8] sm:$0xf] }
 0x3b0   :  { %v1678_v58 = vsub.f32 1.0, %v1677_v62 }
 0x3b1   :  { %v1659_v22 = vmul.f32 %v3712_v39, %v1658_v43  ;;  %2147 = vmatpush.bf16.msrb.mxu1 %v3300_v42  ;;  %v3283_v43 = vld [vmem:[#allocation10 + $0x60] sm:$0xf] }
 0x3b2   :  { %v1679_v50 = vmul.f32 %v3714_v41, %v1678_v58  ;;  %v3613_v58 = vld [vmem:[#allocation10 + $0x64] sm:$0xf]  ;;  %v3284_v54 = vor.u32 %v3614_v47, %v3283_v43 }
 0x3b3   :  { %v1660_v52 = vadd.f32 %v3712_v39, %v1659_v22  ;;  %v3285_v22 = vld [vmem:[#allocation10 + $0x6c] sm:$0xf0] }
 0x3b4   :  { %v1680_v56 = vadd.f32 %v3714_v41, %v1679_v50  ;;  %v3615_v50 = vld [vmem:[#allocation10 + $0x70] sm:$0xf0] }
 0x3b5   :  { %v1664_v0 = vsel %vm1663_vm2, %v3712_v39, %v1660_v52  ;;  %v3303_v39 = vld [vmem:[#allocation10 + $0x80] sm:$0xf]  ;;  %v3288_v52 = vor.u32 %v3613_v58, %v3285_v22 }
 0x3b6   :  { %v1669_v53 = vsel %vm1666_vm3, %v1668_v31, %v1664_v0  ;;  %v1684_v5 = vsel %vm1683_vm6, %v3714_v41, %v1680_v56  ;;  %v3618_v41 = vld [vmem:[#allocation10 + $0x88] sm:$0xf0]  ;;  %v3292_v31 = vor.u32 %v3615_v50, %v3291_v3  ;;  %v3611_v56 = vld [vmem:[#allocation10 + $0x50] sm:$0xf0] }
 0x3b7   :  { %v1696_v59 = vmul.f32 %v1695_v36, %v1669_v53  ;;  %v1689_v7 = vsel %vm1686_vm7, %v1688_v9, %v1684_v5  ;;  %v3304_v62 = vor.u32 %v3618_v41, %v3303_v39  ;;  %2148 = vmatpush.bf16.msrb.mxu1 %v3288_v52  ;;  %v3271_v53 = vld [vmem:[#allocation10 + $0x48] sm:$0xf]  ;;  %v3612_v5 = vld [vmem:[#allocation10 + $0x58] sm:$0xf0]  ;;  %v3603_v39 = vld [vmem:[#allocation10 + $0x10] sm:$0xf0] }
 0x3b8   :  { %v1699_v17 = vsub.f32 1.0, %v1689_v7  ;;  %v1701_v6 = vmul.f32 %v1689_v7, %v4107_v51  ;;  %v3307_v51 = vld [vmem:[#allocation10 + $0x90] sm:$0xf]  ;;  %v3272_v63 = vor.u32 %v3611_v56, %v3271_v53  ;;  %v3244_v47 = vor.u32 %v3603_v39, %v3243_v49  ;;  %v3664_v56 = vld [vmem:[%s4173_s5] ss:$0 sm:$0xff] }
 0x3b9   :  { %v1697_v4 = vadd.f32 %v1696_v59, %v4036_v46  ;;  %v3319_v46 = vld [vmem:[#allocation10 + $0xa8] sm:$0xf]  ;;  %v3308_v28 = vor.u32 %v3620_v40, %v3307_v51  ;;  %2160 = vmatpush.bf16.msrb.mxu2 %v3304_v62  ;;  %v3610_v59 = vld [vmem:[#allocation10 + $0x4c] sm:$0xf]  ;;  %v3255_v40 = vld [vmem:[#allocation10 + $0x20] sm:$0xf]  ;;  %v3236_v62 = vor.u32 %v3602_v35, %v3235_v32 }
 0x3ba   :  { %v3320_v14 = vor.u32 %v3623_v12, %v3319_v46  ;;  %v3276_v7 = vor.u32 %v3610_v59, %v3273_v60  ;;  %v3261_v46 = vld [vmem:[#allocation10 + $0x3c] sm:$0xf0]  ;;  %v3267_v12 = vld [vmem:[#allocation10 + $0x38] sm:$0xf]  ;;  %v3249_v51 = vld [vmem:[#allocation10 + $0x24] sm:$0xf0]  ;;  %v3256_v34 = vor.u32 %v3606_v15, %v3255_v40 }
 0x3bb   :  { %3715 = vtanh.f32 %v1697_v4  ;;  %v3279_v4 = vld [vmem:[#allocation10 + $0x50] sm:$0xf]  ;;  %v3252_v33 = vor.u32 %v3604_v26, %v3249_v51  ;;  %v3647_v40 = vld [vmem:[#allocation10 + $0xb0] sm:$0xf0]  ;;  %v3419_v15 = vld [vmem:[#allocation10 + $0xb4] sm:$0xf0] }
 0x3bc   :  { %2132 = vmatpush.bf16.msrb.mxu0 %v3320_v14  ;;  %2149 = vmatpush.bf16.msrb.mxu1 %v3276_v7  ;;  %v3609_v14 = vld [vmem:[#allocation10 + $0x40] sm:$0xf0] }
 0x3bd   :  { %2161 = vmatpush.bf16.msrb.mxu2 %v3292_v31  ;;  %v3268_v25 = vor.u32 %v3609_v14, %v3267_v12  ;;  %v3645_v49 = vld [vmem:[#allocation10 + $0xa0] sm:$0xf0] }
 0x3c0   :  { %2133 = vmatpush.bf16.msrb.mxu0 %v3308_v28 }
 0x3c1   :  { %v3716_v45 = vpop.eup %3715 }
 0x3c2   :  { %v1700_v21 = vmul.f32 %v3716_v45, %v1699_v17  ;;  %v3280_v17 = vor.u32 %v3612_v5, %v3279_v4  ;;  %v3259_v45 = vld [vmem:[#allocation10 + $0x30] sm:$0xf] }
 0x3c4   :  { %v4122_v8 = vadd.f32 %v1701_v6, %v1700_v21  ;;  %2134 = vmatpush.bf16.msrb.mxu0 %v3296_v38  ;;  %v3608_v21 = vld [vmem:[#allocation10 + $0x38] sm:$0xf0]  ;;  %2162 = vmatpush.bf16.msrb.mxu2 %v3280_v17  ;;  %v3237_v38 = vld [vmem:[#allocation10 + $0xc] sm:$0xf0] }
 0x3c5   :  { %v3260_v6 = vor.u32 %v3608_v21, %v3259_v45  ;;  %v3240_v43 = vor.u32 %v3601_v20, %v3237_v38  ;;  %v3407_v20 = vld [vmem:[#allocation10 + $0x9c] sm:$0xf0]  ;;  %v3413_v38 = vld [vmem:[#allocation10 + $0x98] sm:$0xf] }
 0x3c6   :  { %v1703_v10 = vpack.c.bf16 %v4122_v8, %v4122_v8 }
 0x3c8   :  { %1705 = vst [vmem:[#allocation12 + $0x10] sm:$0xf] %v1703_v10  ;;  %1880 = vmatmul.bf16.vlgmr.msra.gmra.mxu1 %v1703_v10  ;;  %1893 = vmatmul.bf16.vlgmr.msra.gmra.mxu2 %v1703_v10 }
 0x3c9   :  { %1906 = vmatmul.bf16.vlgmr.msrb.gmra.mxu3 %v1703_v10  ;;  %2135 = vmatpush.bf16.msrb.mxu0 %v3284_v54  ;;  %v3607_v10 = vld [vmem:[#allocation10 + $0x34] sm:$0xf] }
 0x3ca   :  { %v3264_v13 = vor.u32 %v3607_v10, %v3261_v46  ;;  %2163 = vmatpush.bf16.msrb.mxu2 %v3268_v25 }
 0x3cc   :  { %2150 = vmatpush.bf16.msrb.mxu1 %v3264_v13 }
 0x3cd   :  { %2136 = vmatpush.bf16.msrb.mxu0 %v3272_v63 }
 0x3ce   :  { %2164 = vmatpush.bf16.msrb.mxu2 %v3256_v34  ;;  %v3643_v34 = vld [vmem:[#allocation10 + $0x94] sm:$0xf] }
 0x3cf   :  { %v3410_v39 = vor.u32 %v3643_v34, %v3407_v20 }
 0x3d0   :  { %2151 = vmatpush.bf16.msrb.mxu1 %v3252_v33  ;;  %v3644_v33 = vld [vmem:[#allocation10 + $0x98] sm:$0xf0] }
 0x3d1   :  { %2137 = vmatpush.bf16.msrb.mxu0 %v3260_v6 }
 0x3d2   :  { %2165 = vmatpush.bf16.msrb.mxu2 %v3244_v47 }
 0x3d4   :  { %2152 = vmatpush.bf16.msrb.mxu1 %v3240_v43  ;;  %v3640_v43 = vld [vmem:[#allocation10 + $0x7c] sm:$0xf] }
 0x3d5   :  { %2138 = vmatpush.bf16.msrb.mxu0 %v3248_v37  ;;  %v3648_v37 = vld [vmem:[#allocation10 + $0xb8] sm:$0xf0] }
 0x3d9   :  { %2139 = vmatpush.bf16.msrb.mxu0 %v3236_v62  ;;  %v3641_v62 = vld [vmem:[#allocation10 + $0x80] sm:$0xf0] }
 0x445   :  { %v1881_v36 = vpop.f32.mrf.mxu1 }
 0x446   :  { %v1911_v0 = vadd.f32 %v1881_v36, %v4012_v48  ;;  %v345_v48 = vadd.f32 %v4057_v1, %v3995_v55 }
 0x448   :  { %v3231_v9 = vmul.f32 -1.442695, %v1911_v0 }
 0x44a   :  { %3717 = vpow2.f32 %v3231_v9 }
 0x44b   :  { %v1894_v19 = vpop.f32.mrf.mxu2 }
 0x44c   :  { %v1931_v27 = vadd.f32 %v1894_v19, %v345_v48  ;;  %v1907_v28 = vpop.f32.mrf.mxu3 }
 0x44d   :  { %v1883_v29 = vpop.f32.mrf.mxu1  ;;  %v1955_v7 = vadd.f32 %v3664_v56, %v1907_v28  ;;  %v3389_v56 = vld [vmem:[#allocation10 + $0x68] sm:$0xf] }
 0x44e   :  { %v3232_v1 = vmul.f32 -1.442695, %v1931_v27  ;;  %v3646_v27 = vld [vmem:[#allocation10 + $0xac] sm:$0xf]  ;;  %v3425_v29 = vld [vmem:[#allocation10 + $0xb0] sm:$0xf] }
 0x44f   :  { %v3422_v32 = vor.u32 %v3646_v27, %v3419_v15  ;;  %v3633_v27 = vld [vmem:[#allocation10 + $0x40] sm:$0xf0] }
 0x450   :  { %v3718_v41 = vpop.eup %3717  ;;  %3719 = vpow2.f32 %v3232_v1  ;;  %v3426_v1 = vor.u32 %v3648_v37, %v3425_v29  ;;  %v3629_v29 = vld [vmem:[#allocation10 + $0x20] sm:$0xf0]  ;;  %v3628_v37 = vld [vmem:[#allocation10 + $0x1c] sm:$0xf] }
 0x451   :  { %v1915_v42 = vadd.f32 1.0, %v3718_v41  ;;  %2405 = vmatpush.bf16.msra.mxu0 %v3422_v32  ;;  %v3414_v41 = vor.u32 %v3645_v49, %v3413_v38  ;;  %v3347_v32 = vld [vmem:[#allocation10 + $0x24] sm:$0xf0] }
 0x452   :  { %2418 = vmatpush.bf16.msra.mxu1 %v3426_v1  ;;  %v3350_v38 = vor.u32 %v3628_v37, %v3347_v32 }
 0x453   :  { %3721 = vrcp.f32 %v1915_v42  ;;  %v1896_v58 = vpop.f32.mrf.mxu2  ;;  %v1927_v36 = vand.u32 2147483648, %v1915_v42  ;;  %v1925_v53 = vand.u32 2147483647, %v1915_v42  ;;  %vm1921_vm9 = vweird.f32 %v1915_v42 }
 0x454   :  { %v1909_v54 = vpop.f32.mrf.mxu3  ;;  %v3395_v58 = vld [vmem:[#allocation10 + $0x84] sm:$0xf0] }
 0x455   :  { %v1928_v4 = vor.u32 1.1754944e-38, %v1927_v36  ;;  %vm1926_vm11 = vcmp.eq.f32.partialorder %v1925_v53, 8.507059e+37  ;;  %2406 = vmatpush.bf16.msra.mxu0 %v3410_v39  ;;  %v3401_v54 = vld [vmem:[#allocation10 + $0x80] sm:$0xf]  ;;  %v3637_v36 = vld [vmem:[#allocation10 + $0x64] sm:$0xf] }
 0x456   :  { %v3720_v22 = vpop.eup %3719  ;;  %2419 = vmatpush.bf16.msra.mxu1 %v3414_v41  ;;  %v3383_v53 = vld [vmem:[#allocation10 + $0x6c] sm:$0xf0]  ;;  %v3333_v39 = vld [vmem:[#allocation10] sm:$0xf]  ;;  %v3626_v41 = vld [vmem:[#allocation10 + $0x8] sm:$0xf0] }
 0x457   :  { %v1935_v3 = vadd.f32 1.0, %v3720_v22  ;;  %v3642_v22 = vld [vmem:[#allocation10 + $0x88] sm:$0xf0] }
 0x459   :  { %v3722_v50 = vpop.eup %3721  ;;  %3723 = vrcp.f32 %v1935_v3  ;;  %v1947_v21 = vand.u32 2147483648, %v1935_v3  ;;  %v1945_v10 = vand.u32 2147483647, %v1935_v3  ;;  %vm1941_vm13 = vweird.f32 %v1935_v3 }
 0x45a   :  { %v1917_v52 = vmul.f32 %v3722_v50, %v1915_v42  ;;  %vm1922_vm8 = vweird.f32 %v3722_v50  ;;  %v3393_v42 = vld [vmem:[#allocation10 + $0x78] sm:$0xf] }
 0x45b   :  { %vm1923_vm10 = vmor %vm1921_vm9, %vm1922_vm8  ;;  %v1948_v48 = vor.u32 1.1754944e-38, %v1947_v21  ;;  %vm1946_vm15 = vcmp.eq.f32.partialorder %v1945_v10, 8.507059e+37  ;;  %v3394_v47 = vor.u32 %v3641_v62, %v3393_v42  ;;  %v3635_v21 = vld [vmem:[#allocation10 + $0x50] sm:$0xf0]  ;;  %v3625_v42 = vld [vmem:[#allocation10 + $0x4] sm:$0xf] }
 0x45c   :  { %v1918_v31 = vsub.f32 1.0, %v1917_v52  ;;  %v3381_v52 = vld [vmem:[#allocation10 + $0x60] sm:$0xf]  ;;  %v3335_v62 = vld [vmem:[#allocation10 + $0xc] sm:$0xf0] }
 0x45e   :  { %v1919_v0 = vmul.f32 %v3722_v50, %v1918_v31  ;;  %v3638_v31 = vld [vmem:[#allocation10 + $0x68] sm:$0xf0] }
 0x45f   :  { %v3724_v59 = vpop.eup %3723 }
 0x460   :  { %v1937_v63 = vmul.f32 %v3724_v59, %v1935_v3  ;;  %v1920_v60 = vadd.f32 %v3722_v50, %v1919_v0  ;;  %vm1942_vm12 = vweird.f32 %v3724_v59  ;;  %v3398_v3 = vor.u32 %v3640_v43, %v3395_v58  ;;  %v3341_v43 = vld [vmem:[#allocation10 + $0x8] sm:$0xf] }
 0x461   :  { %vm1943_vm14 = vmor %vm1941_vm13, %vm1942_vm12  ;;  %v3382_v0 = vor.u32 %v3638_v31, %v3381_v52  ;;  %v3338_v52 = vor.u32 %v3625_v42, %v3335_v62 }
 0x462   :  { %v1938_v5 = vsub.f32 1.0, %v1937_v63  ;;  %v1924_v9 = vsel %vm1923_vm10, %v3722_v50, %v1920_v60  ;;  %v3402_v50 = vor.u32 %v3642_v22, %v3401_v54  ;;  %2407 = vmatpush.bf16.msra.mxu0 %v3398_v3  ;;  %v348_v63 = vadd.f32 %v4059_v2, %v3995_v55 }
 0x463   :  { %v1929_v17 = vsel %vm1926_vm11, %v1928_v4, %v1924_v9  ;;  %v3386_v60 = vor.u32 %v3637_v36, %v3383_v53  ;;  %v3334_v3 = vor.u32 %v3626_v41, %v3333_v39 }
 0x464   :  { %v1939_v45 = vmul.f32 %v3724_v59, %v1938_v5  ;;  %v1956_v6 = vmul.f32 %v1955_v7, %v1929_v17  ;;  %2420 = vmatpush.bf16.msra.mxu1 %v3402_v50 }
 0x466   :  { %v1957_v46 = vadd.f32 %v1956_v6, %v4040_v57  ;;  %v1940_v12 = vadd.f32 %v3724_v59, %v1939_v45  ;;  %v3417_v57 = vld [vmem:[#allocation10 + $0xa8] sm:$0xf]  ;;  %2408 = vmatpush.bf16.msra.mxu0 %v3386_v60  ;;  %v3634_v6 = vld [vmem:[#allocation10 + $0x4c] sm:$0xf] }
 0x467   :  { %v3418_v28 = vor.u32 %v3647_v40, %v3417_v57  ;;  %v3369_v45 = vld [vmem:[#allocation10 + $0x48] sm:$0xf]  ;;  %v3365_v40 = vld [vmem:[#allocation10 + $0x38] sm:$0xf] }
 0x468   :  { %3725 = vtanh.f32 %v1957_v46  ;;  %v1944_v13 = vsel %vm1943_vm14, %v3724_v59, %v1940_v12  ;;  %v3639_v59 = vld [vmem:[#allocation10 + $0x70] sm:$0xf0]  ;;  %v3370_v10 = vor.u32 %v3635_v21, %v3369_v45  ;;  %v3371_v46 = vld [vmem:[#allocation10 + $0x54] sm:$0xf0]  ;;  %v3377_v12 = vld [vmem:[#allocation10 + $0x50] sm:$0xf]  ;;  %v3366_v15 = vor.u32 %v3633_v27, %v3365_v40 }
 0x469   :  { %v1949_v14 = vsel %vm1946_vm15, %v1948_v48, %v1944_v13  ;;  %2392 = vmatpush.bf16.msra.mxu3 %v3418_v28  ;;  %v3390_v4 = vor.u32 %v3639_v59, %v3389_v56  ;;  %v3636_v48 = vld [vmem:[#allocation10 + $0x58] sm:$0xf0]  ;;  %v3374_v2 = vor.u32 %v3634_v6, %v3371_v46  ;;  %v3345_v28 = vld [vmem:[#allocation10 + $0x18] sm:$0xf] }
 0x46a   :  { %v1959_v16 = vsub.f32 1.0, %v1949_v14  ;;  %v1961_v25 = vmul.f32 %v1949_v14, %v4122_v8  ;;  %v3405_v8 = vld [vmem:[#allocation10 + $0x90] sm:$0xf]  ;;  %v3346_v20 = vor.u32 %v3629_v29, %v3345_v28 }
 0x46b   :  { %v3406_v35 = vor.u32 %v3644_v33, %v3405_v8  ;;  %2421 = vmatpush.bf16.msra.mxu1 %v3390_v4  ;;  %2409 = vmatpush.bf16.msra.mxu0 %v3374_v2  ;;  %v3353_v8 = vld [vmem:[#allocation10 + $0x20] sm:$0xf]  ;;  %v3630_v33 = vld [vmem:[#allocation10 + $0x28] sm:$0xf0] }
 0x46c   :  { %v3354_v49 = vor.u32 %v3630_v33, %v3353_v8 }
 0x46d   :  { %2393 = vmatpush.bf16.msra.mxu3 %v3406_v35 }
 0x46e   :  { %v3726_v18 = vpop.eup %3725 }
 0x46f   :  { %v1960_v19 = vmul.f32 %v3726_v18, %v1959_v16  ;;  %v3378_v16 = vor.u32 %v3636_v48, %v3377_v12  ;;  %v3357_v18 = vld [vmem:[#allocation10 + $0x30] sm:$0xf] }
 0x471   :  { %v4134_v26 = vadd.f32 %v1961_v25, %v1960_v19  ;;  %2394 = vmatpush.bf16.msra.mxu3 %v3394_v47  ;;  %v3632_v19 = vld [vmem:[#allocation10 + $0x38] sm:$0xf0]  ;;  %v3631_v25 = vld [vmem:[#allocation10 + $0x34] sm:$0xf]  ;;  %2422 = vmatpush.bf16.msra.mxu1 %v3378_v16 }
 0x472   :  { %v3627_v47 = vld [vmem:[#allocation10 + $0x10] sm:$0xf0] }
 0x473   :  { %v1963_v51 = vpack.c.bf16 %v4134_v26, %v4134_v26  ;;  %v3342_v31 = vor.u32 %v3627_v47, %v3341_v43 }
 0x475   :  { %1965 = vst [vmem:[#allocation12 + $0x14] sm:$0xf] %v1963_v51  ;;  %2140 = vmatmul.bf16.vlgmr.msrb.gmra.mxu0 %v1963_v51  ;;  %2153 = vmatmul.bf16.vlgmr.msrb.gmra.mxu1 %v1963_v51 }
 0x476   :  { %2166 = vmatmul.bf16.vlgmr.msrb.gmra.mxu2 %v1963_v51  ;;  %2395 = vmatpush.bf16.msra.mxu3 %v3382_v0  ;;  %v3359_v51 = vld [vmem:[#allocation10 + $0x3c] sm:$0xf0] }
 0x477   :  { %v3362_v57 = vor.u32 %v3631_v25, %v3359_v51  ;;  %2423 = vmatpush.bf16.msra.mxu1 %v3366_v15 }
 0x479   :  { %2410 = vmatpush.bf16.msra.mxu0 %v3362_v57 }
 0x47a   :  { %2396 = vmatpush.bf16.msra.mxu3 %v3370_v10 }
 0x47b   :  { %2424 = vmatpush.bf16.msra.mxu1 %v3354_v49 }
 0x47d   :  { %2411 = vmatpush.bf16.msra.mxu0 %v3350_v38 }
 0x47f   :  { %2425 = vmatpush.bf16.msra.mxu1 %v3342_v31 }
 0x481   :  { %2412 = vmatpush.bf16.msra.mxu0 %v3338_v52 }
 0x4f2   :  { %v2141_v5 = vpop.f32.mrf.mxu0  ;;  %v2154_v9 = vpop.f32.mrf.mxu1 }
 0x4f3   :  { %v2171_v7 = vadd.f32 %v2141_v5, %v4016_v11  ;;  %v2191_v17 = vadd.f32 %v2154_v9, %v348_v63  ;;  %v3358_v11 = vor.u32 %v3632_v19, %v3357_v18 }
 0x4f5   :  { %v3329_v13 = vmul.f32 -1.442695, %v2171_v7  ;;  %v3330_v14 = vmul.f32 -1.442695, %v2191_v17  ;;  %2397 = vmatpush.bf16.msra.mxu3 %v3358_v11  ;;  %v3665_v7 = vld [vmem:[%s4173_s5] ss:$0 sm:$0xff] }
 0x4f7   :  { %3727 = vpow2.f32 %v3329_v13 }
 0x4f8   :  { %3729 = vpow2.f32 %v3330_v14 }
 0x4f9   :  { %v2167_v1 = vpop.f32.mrf.mxu2  ;;  %2398 = vmatpush.bf16.msra.mxu3 %v3346_v20 }
 0x4fa   :  { %v2143_v34 = vpop.f32.mrf.mxu0  ;;  %v2156_v35 = vpop.f32.mrf.mxu1  ;;  %v2215_v10 = vadd.f32 %v3665_v7, %v2167_v1 }
 0x4fd   :  { %v3728_v58 = vpop.eup %3727  ;;  %2399 = vmatpush.bf16.msra.mxu3 %v3334_v3 }
 0x4fe   :  { %v3730_v54 = vpop.eup %3729  ;;  %v2175_v22 = vadd.f32 1.0, %v3728_v58 }
 0x4ff   :  { %v2195_v50 = vadd.f32 1.0, %v3730_v54 }
 0x500   :  { %3731 = vrcp.f32 %v2175_v22  ;;  %v2187_v4 = vand.u32 2147483648, %v2175_v22  ;;  %v2185_v9 = vand.u32 2147483647, %v2175_v22  ;;  %vm2181_vm1 = vweird.f32 %v2175_v22 }
 0x501   :  { %3733 = vrcp.f32 %v2195_v50  ;;  %v2169_v36 = vpop.f32.mrf.mxu2  ;;  %v2207_v48 = vand.u32 2147483648, %v2195_v50  ;;  %vm2201_vm5 = vweird.f32 %v2195_v50  ;;  %v2205_v14 = vand.u32 2147483647, %v2195_v50 }
 0x502   :  { %v2188_v21 = vor.u32 1.1754944e-38, %v2187_v4  ;;  %vm2186_vm3 = vcmp.eq.f32.partialorder %v2185_v9, 8.507059e+37 }
 0x503   :  { %v2208_v18 = vor.u32 1.1754944e-38, %v2207_v48  ;;  %vm2206_vm7 = vcmp.eq.f32.partialorder %v2205_v14, 8.507059e+37 }
 0x506   :  { %v3732_v0 = vpop.eup %3731 }
 0x507   :  { %v3734_v53 = vpop.eup %3733  ;;  %v2177_v56 = vmul.f32 %v3732_v0, %v2175_v22  ;;  %vm2182_vm0 = vweird.f32 %v3732_v0 }
 0x508   :  { %v2197_v59 = vmul.f32 %v3734_v53, %v2195_v50  ;;  %vm2183_vm2 = vmor %vm2181_vm1, %vm2182_vm0  ;;  %vm2202_vm4 = vweird.f32 %v3734_v53 }
 0x509   :  { %v2178_v63 = vsub.f32 1.0, %v2177_v56  ;;  %vm2203_vm6 = vmor %vm2201_vm5, %vm2202_vm4 }
 0x50a   :  { %v2198_v60 = vsub.f32 1.0, %v2197_v59 }
 0x50b   :  { %v2179_v5 = vmul.f32 %v3732_v0, %v2178_v63 }
 0x50c   :  { %v2199_v17 = vmul.f32 %v3734_v53, %v2198_v60 }
 0x50d   :  { %v2180_v45 = vadd.f32 %v3732_v0, %v2179_v5 }
 0x50e   :  { %v2200_v12 = vadd.f32 %v3734_v53, %v2199_v17 }
 0x50f   :  { %v2184_v6 = vsel %vm2183_vm2, %v3732_v0, %v2180_v45  ;;  %v379_v0 = vadd.f32 %v4063_v44, %v4005_v23 }
 0x510   :  { %v2189_v46 = vsel %vm2186_vm3, %v2188_v21, %v2184_v6  ;;  %v2204_v16 = vsel %vm2203_vm6, %v3734_v53, %v2200_v12 }
 0x511   :  { %v2216_v13 = vmul.f32 %v2215_v10, %v2189_v46  ;;  %v2209_v19 = vsel %vm2206_vm7, %v2208_v18, %v2204_v16 }
 0x512   :  { %v2219_v25 = vsub.f32 1.0, %v2209_v19  ;;  %v2221_v57 = vmul.f32 %v2209_v19, %v4134_v26 }
 0x513   :  { %v2217_v2 = vadd.f32 %v2216_v13, %v4047_v61  ;;  %v350_v61 = vadd.f32 %v4061_v30, %v3995_v55 }
 0x515   :  { %3735 = vtanh.f32 %v2217_v2 }
 0x51b   :  { %v3736_v51 = vpop.eup %3735 }
 0x51c   :  { %v2220_v11 = vmul.f32 %v3736_v51, %v2219_v25 }
 0x51e   :  { %v4146_v40 = vadd.f32 %v2221_v57, %v2220_v11 }
 0x520   :  { %v2223_v27 = vpack.c.bf16 %v4146_v40, %v4146_v40 }
 0x522   :  { %2225 = vst [vmem:[#allocation12 + $0x18] sm:$0xf] %v2223_v27  ;;  %2400 = vmatmul.bf16.vlgmr.msra.gmra.mxu3 %v2223_v27  ;;  %2413 = vmatmul.bf16.vlgmr.msra.gmra.mxu0 %v2223_v27 }
 0x523   :  { %2426 = vmatmul.bf16.vlgmr.msra.gmra.mxu1 %v2223_v27 }
 0x59f   :  { %v2414_v28 = vpop.f32.mrf.mxu0 }
 0x5a0   :  { %v2451_v15 = vadd.f32 %v2414_v28, %v350_v61  ;;  %v2427_v29 = vpop.f32.mrf.mxu1 }
 0x5a2   :  { %v3428_v37 = vmul.f32 -1.442695, %v2451_v15 }
 0x5a4   :  { %3737 = vpow2.f32 %v3428_v37 }
 0x5a5   :  { %v2401_v32 = vpop.f32.mrf.mxu3 }
 0x5a6   :  { %v2431_v26 = vadd.f32 %v2401_v32, %v4022_v24  ;;  %v3666_v24 = vld [vmem:[%s4173_s5] ss:$0 sm:$0xff]  ;;  %s3909_s5 = smov [#allocation13]  }
 0x5a7   :  { %v2416_v1 = vpop.f32.mrf.mxu0  ;;  %v2475_v50 = vadd.f32 %v3666_v24, %v2427_v29  ;;  %s2507_s16 = sshll.u32 %s3909_s5, 4  ;;  %s2508_s16 = int_to_ptr.vmem [resolvable:$true] %s2507_s16 }
 0x5a8   :  { %v3427_v8 = vmul.f32 -1.442695, %v2431_v26  ;;  %v2429_v33 = vpop.f32.mrf.mxu1 }
 0x5aa   :  { %v3738_v34 = vpop.eup %3737  ;;  %3739 = vpow2.f32 %v3427_v8 }
 0x5ab   :  { %v2455_v35 = vadd.f32 1.0, %v3738_v34 }
 0x5ad   :  { %v2403_v20 = vpop.f32.mrf.mxu3  ;;  %3741 = vrcp.f32 %v2455_v35  ;;  %v2467_v53 = vand.u32 2147483648, %v2455_v35  ;;  %vm2461_vm13 = vweird.f32 %v2455_v35  ;;  %v2465_v59 = vand.u32 2147483647, %v2455_v35 }
 0x5af   :  { %v2468_v4 = vor.u32 1.1754944e-38, %v2467_v53  ;;  %vm2466_vm15 = vcmp.eq.f32.partialorder %v2465_v59, 8.507059e+37 }
 0x5b0   :  { %v3740_v38 = vpop.eup %3739 }
 0x5b1   :  { %v2435_v49 = vadd.f32 1.0, %v3740_v38 }
 0x5b3   :  { %3743 = vrcp.f32 %v2435_v49  ;;  %v3742_v55 = vpop.eup %3741  ;;  %v2447_v43 = vand.u32 2147483648, %v2435_v49  ;;  %v2445_v58 = vand.u32 2147483647, %v2435_v49  ;;  %vm2441_vm9 = vweird.f32 %v2435_v49 }
 0x5b4   :  { %v2457_v30 = vmul.f32 %v3742_v55, %v2455_v35  ;;  %vm2462_vm12 = vweird.f32 %v3742_v55 }
 0x5b5   :  { %v2448_v3 = vor.u32 1.1754944e-38, %v2447_v43  ;;  %vm2446_vm11 = vcmp.eq.f32.partialorder %v2445_v58, 8.507059e+37  ;;  %vm2463_vm14 = vmor %vm2461_vm13, %vm2462_vm12 }
 0x5b6   :  { %v2458_v42 = vsub.f32 1.0, %v2457_v30 }
 0x5b8   :  { %v2459_v54 = vmul.f32 %v3742_v55, %v2458_v42 }
 0x5b9   :  { %v3744_v39 = vpop.eup %3743 }
 0x5ba   :  { %v2437_v41 = vmul.f32 %v3744_v39, %v2435_v49  ;;  %vm2442_vm8 = vweird.f32 %v3744_v39  ;;  %v2460_v31 = vadd.f32 %v3742_v55, %v2459_v54 }
 0x5bb   :  { %vm2443_vm10 = vmor %vm2441_vm9, %vm2442_vm8 }
 0x5bc   :  { %v2438_v62 = vsub.f32 1.0, %v2437_v41  ;;  %v2464_v60 = vsel %vm2463_vm14, %v3742_v55, %v2460_v31 }
 0x5bd   :  { %v2469_v5 = vsel %vm2466_vm15, %v2468_v4, %v2464_v60 }
 0x5be   :  { %v2439_v47 = vmul.f32 %v3744_v39, %v2438_v62  ;;  %v2479_v9 = vsub.f32 1.0, %v2469_v5  ;;  %v2481_v23 = vmul.f32 %v2469_v5, %v4146_v40 }
 0x5c0   :  { %v2440_v22 = vadd.f32 %v3744_v39, %v2439_v47 }
 0x5c2   :  { %v2444_v52 = vsel %vm2443_vm10, %v3744_v39, %v2440_v22 }
 0x5c3   :  { %v2449_v36 = vsel %vm2446_vm11, %v2448_v3, %v2444_v52 }
 0x5c4   :  { %v2476_v56 = vmul.f32 %v2475_v50, %v2449_v36 }
 0x5c6   :  { %v2477_v63 = vadd.f32 %v2476_v56, %v379_v0 }
 0x5c8   :  { %3745 = vtanh.f32 %v2477_v63 }
 0x5ce   :  { %v3746_v7 = vpop.eup %3745 }
 0x5cf   :  { %v2480_v44 = vmul.f32 %v3746_v7, %v2479_v9 }
 0x5d1   :  { %v2482_v17 = vadd.f32 %v2481_v23, %v2480_v44 }
 0x5d3   :  { %2488 = vst [vmem:[#allocation13] sm:$0xff] %v2482_v17  ;;  %v2483_v45 = vpack.c.bf16 %v2482_v17, %v2482_v17 }
 0x5d4   :  { %2512 = dma.vmem_to_hbm [thread:$0]  %s2508_s16, 128, %s2510_s18, [#allocation14]  }
 0x5d5   :  { %2485 = vst [vmem:[#allocation12 + $0x1c] sm:$0xf] %v2483_v45 }
 0x5d6   :  { %2501 = dma.vmem_to_hbm [thread:$0]  %s2494_s20, 512, %s2496_s2, [#allocation6], %s3903_s11, %s3903_s11, %s3904_s12  }
 0x5d7   :  { %3897 = dma.done.wait [#allocation6], 512  }
 0x5d8   :  { %3898 = vsyncadd [#allocation6], 4294966784 }
 0x5d9   :  { %3899 = dma.done.wait [#allocation14], 128  }
 0x5da   :  { %3900 = vsyncadd [#allocation14], 4294967168 }
 0x5db   :  { %2521 = vsyncpa [#allocation5], 1 }
 0x5dc   :  { %2522 = vsyncpa [#allocation8], 1 }
 0x5dd   :  { %2523 = vsyncpa [#allocation11], 1 }
 0x5de   :  { %2524 = vsyncpa [#allocation6], 1 }
 0x5df   :  { %2525 = vsyncpa [#allocation14], 1 }

</bundles_post_ra>
